<compile_context>
chip_gen: v6e
topology: v6e:2x2x1
jax: 0.10.0
libtpu: 0.0.40
codegen_flags: <defaults>
</compile_context>

<pallas_src>
import functools

import jax
import jax.numpy as jnp
from jax.experimental import pallas as pl
from jax.experimental.pallas import tpu as pltpu

_N = 18 * 18        # 324 flattened 18x18 mask / feature size
_SUB = 8            # sublanes in the partial-sum output tile
_LANES = 128        # lanes in the partial-sum output tile
_SMALL_B = 256      # below this, plain XLA beats pallas_call launch overhead


def _partial_kernel(mask_ref, x_ref, y_ref, out_ref, *, batch, tile_rows,
                    need_row_mask):
    # Cast AFTER the load so bf16/f16 inputs are DMA'd at half the bytes.
    m = mask_ref[...].astype(jnp.float32)          # (1, N)
    x = x_ref[...].astype(jnp.float32)             # (tile_rows, N)
    y = y_ref[...].astype(jnp.float32)
    d = m * (x - y)                                # == m*x - m*y (2 VALU ops)
    sq = d * d
    if need_row_mask:
        # Ragged last batch tile: rows with global index >= batch hold
        # unspecified data (no wrapper-side padding) -> select them to 0.
        row = jax.lax.broadcasted_iota(jnp.int32, (tile_rows, 1), 0)
        gid = pl.program_id(0) * tile_rows + row
        sq = jnp.where(gid < batch, sq, 0.0)
    total = jnp.sum(sq)                            # XLU cross-lane reduce
    # Lane-dense (1,8,128) output block; the partial sum lives only at
    # [0,0,0] so the wrapper can jnp.sum the whole partials array.
    sub = jax.lax.broadcasted_iota(jnp.int32, out_ref.shape, 1)
    lane = jax.lax.broadcasted_iota(jnp.int32, out_ref.shape, 2)
    out_ref[...] = jnp.where((sub == 0) & (lane == 0), total, 0.0)


def vim1_mse(mask, inputs, targets):
    """mask: (324,); inputs/targets: (B, 324). Returns scalar f32 MSE."""
    B, N = inputs.shape
    assert N == _N and mask.shape == (N,) and targets.shape == (B, N)
    mask_f32 = mask.astype(jnp.float32)

    # Small-batch fallback: a fused XLA reduction beats the fixed
    # pallas_call launch + grid-step overhead for tiny B.
    if B < _SMALL_B:
        x = mask_f32[None, :] * inputs.astype(jnp.float32)
        y = mask_f32[None, :] * targets.astype(jnp.float32)
        return jnp.mean((x - y) ** 2)

    # Batch tile: ~512 rows/tile, always >= 2 tiles (v7x megacore + DMA
    # pipelining), capped at 1024 rows.  16-row alignment keeps 16-bit
    # sublane packing dense; 8 suffices for f32.
    align = 16 if jnp.dtype(inputs.dtype).itemsize == 2 else 8
    tiles_goal = max(2, min(8, -(-B // 512)))
    tb = -(-B // tiles_goal)
    tb = ((tb + align - 1) // align) * align
    tb = min(tb, 1024)
    num_tiles = -(-B // tb)
    need_row_mask = (B % tb) != 0

    kernel = functools.partial(_partial_kernel, batch=B, tile_rows=tb,
                               need_row_mask=need_row_mask)

    # No padding anywhere: block last-dim equals the full array dim (324),
    # which is legal under the (8,128) rule; partial last vregs are handled
    # by the VPU mask, which is nowhere near the bottleneck.
    partials = pl.pallas_call(
        kernel,
        out_shape=jax.ShapeDtypeStruct((num_tiles, _SUB, _LANES), jnp.float32),
        grid_spec=pltpu.PrefetchScalarGridSpec(
            num_scalar_prefetch=0,
            grid=(num_tiles,),
            in_specs=[
                pl.BlockSpec((1, N), lambda i: (0, 0)),    # mask, pinned
                pl.BlockSpec((tb, N), lambda i: (i, 0)),   # inputs tile
                pl.BlockSpec((tb, N), lambda i: (i, 0)),   # targets tile
            ],
            out_specs=pl.BlockSpec((1, _SUB, _LANES), lambda i: (i, 0, 0)),
        ),
        compiler_params=pltpu.CompilerParams(
            dimension_semantics=("parallel",)),
    )(mask_f32.reshape(1, N), inputs, targets)

    # Tiny final reduce + mean scale by the ORIGINAL element count B*324.
    inv_n = jnp.float32(1.0 / (B * N))
    return jnp.sum(partials) * inv_n


def vim1_mse_ref(mask, inputs, targets):
    x = mask[None, :].astype(jnp.float32) * inputs.astype(jnp.float32)
    y = mask[None, :].astype(jnp.float32) * targets.astype(jnp.float32)
    return jnp.mean((x - y) ** 2)


if __name__ == "__main__":
    # Original mask is an 18x18 binary-ish ROI map flattened to 324 entries.
    # TODO(synk): original loads mask.mat + cv2.resize; generated in-script.
    N = 18 * 18
    key = jax.random.PRNGKey(0)
    k_mask, k_data = jax.random.split(key, 2)
    mask = (jax.random.uniform(k_mask, (N,)) > 0.5).astype(jnp.float32)

    # B=2   -> small-batch XLA fallback path
    # B=500 -> Pallas path, ragged last tile (in-kernel row mask)
    # B=512 -> Pallas path, exact tiling (2 tiles of 256 rows)
    for B in (2, 500, 512):
        k_in, k_tgt = jax.random.split(jax.random.fold_in(k_data, B), 2)
        inputs = jax.random.normal(k_in, (B, N), dtype=jnp.float32)
        targets = jax.random.normal(k_tgt, (B, N), dtype=jnp.float32)

        loss = jax.block_until_ready(vim1_mse(mask, inputs, targets))
        ref = jax.block_until_ready(vim1_mse_ref(mask, inputs, targets))
        assert jnp.allclose(loss, ref, rtol=1e-4, atol=1e-7), (B, loss, ref)

    print("KERNEL_OK")
</pallas_src>

<mosaic_0001>
module attributes {stable_mosaic.version = 11 : i64} {
  func.func @_partial_kernel(%arg0: i32, %arg1: memref<1x324xf32, #tpu.memory_space<vmem>>, %arg2: memref<256x324xf32, #tpu.memory_space<vmem>>, %arg3: memref<256x324xf32, #tpu.memory_space<vmem>>, %arg4: memref<1x8x128xf32, #tpu.memory_space<vmem>>) attributes {dimension_semantics = [#tpu.dimension_semantics<parallel>], iteration_bounds = array<i64: 2>, scalar_prefetch = 0 : i64, scratch_operands = 0 : i64, tpu.core_type = #tpu.core_type<tc>, window_params = [{pipeline_mode = #tpu.pipeline_mode<synchronous>, transform_indices = @transform_0, window_bounds = array<i64: 1, 324>}, {transform_indices = @transform_1, window_bounds = array<i64: 256, 324>}, {transform_indices = @transform_2, window_bounds = array<i64: 256, 324>}, {transform_indices = @transform_3, window_bounds = array<i64: 1, 8, 128>}]} {
    %c0 = arith.constant 0 : index
    %c0_0 = arith.constant 0 : index
    %0 = vector.load %arg1[%c0, %c0_0] : memref<1x324xf32, #tpu.memory_space<vmem>>, vector<1x324xf32>
    %c0_1 = arith.constant 0 : index
    %c0_2 = arith.constant 0 : index
    %1 = vector.load %arg2[%c0_1, %c0_2] : memref<256x324xf32, #tpu.memory_space<vmem>>, vector<256x324xf32>
    %c0_3 = arith.constant 0 : index
    %c0_4 = arith.constant 0 : index
    %2 = vector.load %arg3[%c0_3, %c0_4] : memref<256x324xf32, #tpu.memory_space<vmem>>, vector<256x324xf32>
    %3 = arith.subf %1, %2 : vector<256x324xf32>
    %4 = vector.broadcast %0 : vector<1x324xf32> to vector<256x324xf32>
    %5 = arith.mulf %4, %3 : vector<256x324xf32>
    %6 = arith.mulf %5, %5 : vector<256x324xf32>
    %7 = tpu.iota {dimensions = array<i32: 0>} : vector<256x1xi32>
    %c256_i32 = arith.constant 256 : i32
    %8 = arith.muli %arg0, %c256_i32 : i32
    %9 = vector.broadcast %8 : i32 to vector<256x1xi32>
    %10 = arith.addi %9, %7 : vector<256x1xi32>
    %c500_i32 = arith.constant 500 : i32
    %11 = vector.broadcast %c500_i32 : i32 to vector<256x1xi32>
    %12 = arith.cmpi slt, %10, %11 : vector<256x1xi32>
    %cst = arith.constant 0.000000e+00 : f32
    %13 = vector.shape_cast %12 : vector<256x1xi1> to vector<256x1xi1>
    %14 = vector.broadcast %13 : vector<256x1xi1> to vector<256x324xi1>
    %15 = vector.broadcast %cst : f32 to vector<256x324xf32>
    %16 = arith.select %14, %6, %15 : vector<256x324xi1>, vector<256x324xf32>
    %17 = vector.shape_cast %16 : vector<256x324xf32> to vector<1x256x324xf32>
    %cst_5 = arith.constant dense<0.000000e+00> : vector<1xf32>
    %18 = vector.multi_reduction <add>, %17, %cst_5 [1, 2] : vector<1x256x324xf32> to vector<1xf32>
    %19 = vector.shape_cast %18 : vector<1xf32> to vector<1x1x1xf32>
    %20 = vector.extract %19[0, 0, 0] : f32 from vector<1x1x1xf32>
    %21 = tpu.iota {dimensions = array<i32: 1>} : vector<1x8x128xi32>
    %22 = tpu.iota {dimensions = array<i32: 2>} : vector<1x8x128xi32>
    %c0_i32 = arith.constant 0 : i32
    %23 = vector.broadcast %c0_i32 : i32 to vector<1x8x128xi32>
    %24 = arith.cmpi eq, %21, %23 : vector<1x8x128xi32>
    %c0_i32_6 = arith.constant 0 : i32
    %25 = vector.broadcast %c0_i32_6 : i32 to vector<1x8x128xi32>
    %26 = arith.cmpi eq, %22, %25 : vector<1x8x128xi32>
    %27 = arith.andi %24, %26 : vector<1x8x128xi1>
    %cst_7 = arith.constant 0.000000e+00 : f32
    %28 = vector.broadcast %20 : f32 to vector<1x8x128xf32>
    %29 = vector.broadcast %cst_7 : f32 to vector<1x8x128xf32>
    %30 = arith.select %27, %28, %29 : vector<1x8x128xi1>, vector<1x8x128xf32>
    %c0_8 = arith.constant 0 : index
    %c0_9 = arith.constant 0 : index
    %c0_10 = arith.constant 0 : index
    %31 = vector.load %arg4[%c0_8, %c0_9, %c0_10] : memref<1x8x128xf32, #tpu.memory_space<vmem>>, vector<1x8x128xf32>
    tpu.vector_store %arg4[%c0_8, %c0_9, %c0_10], %30 {strides = array<i32>} : memref<1x8x128xf32, #tpu.memory_space<vmem>>, vector<1x8x128xf32>,
    return
  }
  func.func @transform_0(%arg0: i32) -> (i32, i32) {
    %c0_i32 = arith.constant 0 : i32
    %c0_i32_0 = arith.constant 0 : i32
    %c0_i32_1 = arith.constant 0 : i32
    return %c0_i32, %c0_i32_0 : i32, i32
  }
  func.func @transform_1(%arg0: i32) -> (i32, i32) {
    %c0_i32 = arith.constant 0 : i32
    %c0_i32_0 = arith.constant 0 : i32
    return %arg0, %c0_i32 : i32, i32
  }
  func.func @transform_2(%arg0: i32) -> (i32, i32) {
    %c0_i32 = arith.constant 0 : i32
    %c0_i32_0 = arith.constant 0 : i32
    return %arg0, %c0_i32 : i32, i32
  }
  func.func @transform_3(%arg0: i32) -> (i32, i32, i32) {
    %c0_i32 = arith.constant 0 : i32
    %c0_i32_0 = arith.constant 0 : i32
    %c0_i32_1 = arith.constant 0 : i32
    return %arg0, %c0_i32, %c0_i32_0 : i32, i32, i32
  }
}

</mosaic_0001>

<bundles_post_ra>
// kernel: tpu_custom_call.1
= control target key start
LH: loop header
LB: loop body
LE: loop exit
PB: predicated region body
PF: predicated region fallthrough
CT: control target
= control target key end

     0   :  { %8 = vsyncpa [#allocation3], 0  ;;  %s3475_s0 = inlined_call_operand.vmem [shape: f32[1,324], index: 0, kind: input, shape index: {}]   ;;  %s3476_s1 = inlined_call_operand.vmem [shape: f32[500,324], index: 1, kind: input, shape index: {}]   ;;  %s3477_s2 = inlined_call_operand.vmem [shape: f32[500,324], index: 2, kind: input, shape index: {}]   ;;  %s3478_s3 = inlined_call_operand.hbm [shape: f32[2,8,128], index: 3, kind: output, shape index: {}]  }
   0x1   :  { %10 = vsyncpa [#allocation3 + $0x1], 0  ;;  %s1374_s12 = smov 0   ;;  %s1376_s13 = smov 0  }
   0x2   :  { %s1378_s14 = smov 0   ;;  %s1380_s15 = smov 0  }
   0x3 LB: > { %s1395_s16 = sadd.s32 4294967295, %s1351_s15   ;;  %s1235_s17 = sadd.s32 4294967294, %s1351_s15   ;;  %s1351_s15 = sphi %s1380_s15, %s4089_s15   ;;  %s1347_s14 = sphi %s1378_s14, %s4088_s14   ;;  %s1343_s13 = sphi %s1376_s13, %s4087_s13   ;;  %s1339_s12 = sphi %s1374_s12, %s4086_s12  }
   0x4   : > { %s1399_s18 = sadd.s32 1, %s1351_s15   ;;  %s96_s19 = sadd.s32 1, %s1347_s14 }
   0x5   : > { %s93_s20 = ssub.s32 %s1351_s15, %s1399_s18  ;;  %p106_p0 = scmp.ne.s32.totalorder %s1347_s14, %s1343_s13 }
   0x6   : > { %p94_p1 = scmp.eq.s32.totalorder %s93_s20, 0  ;;  %p107_p2 = scmp.eq.s32.totalorder %s1395_s16, 1 }
   0x7   : > { %p112_p3 = scmp.ne.s32.totalorder %s1343_s13, %s1339_s12  ;;  %p113_p4 = scmp.eq.s32.totalorder %s1235_s17, 1 }
   0x8   : > { %s1410_s21 = scalar_select %p94_p1, %s1347_s14, %s96_s19  }
   0x9   : > { %p1412_p5 = por %p107_p2, %p106_p0  ;;  %p1416_p6 = por %p113_p4, %p112_p3 }
   0xa   : > { %p1238_p7 = scmp.ge.s32.totalorder %s1351_s15, 1  ;;  %p174_p8 = scmp.lt.s32.totalorder %s1351_s15, 3 }
   0xc   : > { %p175_p9 = pnand %p1238_p7, %p174_p8 }
   0xe   : > { %178 = sbr.rel (%p175_p9) target bundleno = 590 (0x24e), region = 32 }
  0x13   : > { %s1240_s24 = sshll.u32 %s1395_s16, 5  ;;  %v3479_v9 = vlaneseq  ;;  %s1244_s5 = sshll.u32 %s1395_s16, 8  ;;  %v1641_v34 = vld [vmem:[%s3475_s0] sm:$0x7] }
  0x14   : > { %p221_p10 = scmp.lt.s32.totalorder %s1240_s24, 62  ;;  %v1611_v55 = vstv %s1244_s5  ;;  %s212_s8 = sand.u32 1, %s1343_s13  }
  0x15   : > { %v1536_v37 = vshrl.u32 %v3479_v9, 7  ;;  %3602 = vst [vmem:[#allocation28_spill] sm:$0xff] %v1611_v55  ;;  %s1239_s9 = sshll.u32 %s212_s8, 3  ;;  %s1246_s10 = sshll.u32 %s1395_s16, 7 }
  0x16   : > { %s4091_s24 = smov (!%p221_p10, %s1240_s24), 62  ;;  %s214_s11 = scalar_lea.vmem [#allocation2], %s1239_s9 }
  0x17   : > { %s1249_s25 = smul.u32 24, %s4091_s24  ;;  %3587 = vst [vmem:[#allocation13_spill] sm:$0xff] %v1536_v37  ;;  %v541_v35 = vsub.s32 0, %v1536_v37  ;;  %s1164_s17 = sshll.u32 %s214_s11, 4  ;;  %s1165_s17 = int_to_ptr.vmem [resolvable:$true] %s1164_s17 }
  0x18   : > { %s1151_s26 = scalar_lea.sflag [#allocation3], %s212_s8  ;;  %s1291_s27 = scalar_lea.vmem %s1165_s17, 128 }
  0x19   : > { %s1426_s28 = scalar_lea.vmem %s3476_s1, %s1249_s25  ;;  %s1458_s4 = scalar_lea.vmem %s3477_s2, %s1249_s25 }
  0x1a   : > { %v1429_v0 = vld [vmem:[%s1426_s28 + $0x108] sm:$0xff]  ;;  %v1432_v1 = vld [vmem:[%s1426_s28 + $0x110] sm:$0xff]  ;;  %v1435_v2 = vld [vmem:[%s1426_s28 + $0x118] sm:$0xff]  ;;  %s3440_s25 = scalar_lea.hbm %s3478_s3, %s1246_s10  ;;  %p1292_p11 = scmp.ne.s32.totalorder %s1165_s17, %s1291_s27 }
  0x1b   : > { %v1438_v3 = vld [vmem:[%s1426_s28 + $0x120] sm:$0xff]  ;;  %v1441_v4 = vld [vmem:[%s1426_s28 + $0x128] sm:$0xff]  ;;  %v1444_v5 = vld [vmem:[%s1426_s28 + $0x130] sm:$0xff]  ;;  %s1353_s16 = smov [#allocation2]  }
  0x1c   : > { %v1447_v6 = vld [vmem:[%s1426_s28 + $0x138] sm:$0xff]  ;;  %v1450_v7 = vld [vmem:[%s1426_s28 + $0x140] sm:$0xff]  ;;  %v1453_v8 = vld [vmem:[%s1426_s28 + $0x148] sm:$0xff]  ;;  %p1293_p12 = pnand %p1292_p11, %p1412_p5 }
  0x1d   : > { %v1461_v10 = vld [vmem:[%s1426_s28 + $0x150] sm:$0xff]  ;;  %v1464_v11 = vld [vmem:[%s1426_s28 + $0x158] sm:$0xff]  ;;  %v1467_v12 = vld [vmem:[%s1426_s28 + $0x160] sm:$0xff] }
  0x1e   : > { %v1470_v13 = vld [vmem:[%s1426_s28 + $0x168] sm:$0xff]  ;;  %v1473_v14 = vld [vmem:[%s1426_s28 + $0x170] sm:$0xff]  ;;  %v1476_v15 = vld [vmem:[%s1426_s28 + $0x178] sm:$0xff]  ;;  %p1294_p13 = pneg %p1293_p12 }
  0x1f   : > { %3579 = vst [vmem:[#allocation5_spill] sm:$0xff] %v1473_v14  ;;  %3580 = vst [vmem:[#allocation6_spill] sm:$0xff] %v1476_v15  ;;  %v1479_v16 = vld [vmem:[%s1458_s4 + $0x108] sm:$0xff]  ;;  %v1482_v17 = vld [vmem:[%s1458_s4 + $0x110] sm:$0xff] }
  0x20   : > { %v1485_v18 = vld [vmem:[%s1458_s4 + $0x118] sm:$0xff]  ;;  %v1488_v19 = vld [vmem:[%s1426_s28 + $0x180] sm:$0xff]  ;;  %v1491_v20 = vld [vmem:[%s1426_s28 + $0x188] sm:$0xff] }
  0x21   : > { %3581 = vst [vmem:[#allocation7_spill] sm:$0xff] %v1488_v19  ;;  %3582 = vst [vmem:[#allocation8_spill] sm:$0xff] %v1491_v20  ;;  %v1494_v21 = vld [vmem:[%s1426_s28 + $0x190] sm:$0xff]  ;;  %v1497_v22 = vld [vmem:[%s1458_s4 + $0x120] sm:$0xff]  ;;  %v545_v20 = vsub.s32 1, %v1536_v37 }
  0x22   : > { %3583 = vst [vmem:[#allocation9_spill] sm:$0xff] %v1494_v21  ;;  %v1500_v23 = vld [vmem:[%s1458_s4 + $0x128] sm:$0xff]  ;;  %v1503_v24 = vld [vmem:[%s1458_s4 + $0x130] sm:$0xff]  ;;  %v1512_v28 = vld [vmem:[%s1426_s28 + $0x198] sm:$0xff] }
  0x23   : > { %3584 = vst [vmem:[#allocation10_spill] sm:$0xff] %v1512_v28  ;;  %v1515_v29 = vld [vmem:[%s1426_s28 + $0x1a0] sm:$0xff]  ;;  %v1518_v30 = vld [vmem:[%s1426_s28 + $0x1a8] sm:$0xff]  ;;  %v1521_v31 = vld [vmem:[%s1458_s4 + $0x138] sm:$0xff] }
  0x24   : > { %3585 = vst [vmem:[#allocation11_spill] sm:$0xff] %v1515_v29  ;;  %3586 = vst [vmem:[#allocation12_spill] sm:$0xff] %v1518_v30  ;;  %v1524_v32 = vld [vmem:[%s1458_s4 + $0x140] sm:$0xff]  ;;  %v1527_v33 = vld [vmem:[%s1458_s4 + $0x148] sm:$0xff] }
  0x25   : > { %v1540_v38 = vld [vmem:[%s1426_s28 + $0x1b0] sm:$0xff]  ;;  %v1543_v39 = vld [vmem:[%s1426_s28 + $0x1b8] sm:$0xff]  ;;  %v1546_v40 = vld [vmem:[%s1426_s28 + $0x1c0] sm:$0xff] }
  0x26   : > { %3588 = vst [vmem:[#allocation14_spill] sm:$0xff] %v1540_v38  ;;  %3589 = vst [vmem:[#allocation15_spill] sm:$0xff] %v1543_v39  ;;  %v1549_v41 = vld [vmem:[%s1458_s4 + $0x150] sm:$0xff]  ;;  %v1552_v42 = vld [vmem:[%s1458_s4 + $0x158] sm:$0xff] }
  0x27   : > { %3590 = vst [vmem:[#allocation16_spill] sm:$0xff] %v1546_v40  ;;  %v1555_v43 = vld [vmem:[%s1458_s4 + $0x160] sm:$0xff]  ;;  %v1564_v47 = vld [vmem:[%s1426_s28 + $0x1c8] sm:$0xff]  ;;  %v1567_v48 = vld [vmem:[%s1426_s28 + $0x1d0] sm:$0xff] }
  0x28   : > { %3591 = vst [vmem:[#allocation17_spill] sm:$0xff] %v1564_v47  ;;  %3592 = vst [vmem:[#allocation18_spill] sm:$0xff] %v1567_v48  ;;  %v1570_v49 = vld [vmem:[%s1426_s28 + $0x1d8] sm:$0xff]  ;;  %v1573_v50 = vld [vmem:[%s1458_s4 + $0x168] sm:$0xff] }
  0x29   : > { %3593 = vst [vmem:[#allocation19_spill] sm:$0xff] %v1570_v49  ;;  %v1576_v51 = vld [vmem:[%s1458_s4 + $0x170] sm:$0xff]  ;;  %v1579_v52 = vld [vmem:[%s1458_s4 + $0x178] sm:$0xff]  ;;  %v1588_v56 = vld [vmem:[%s1426_s28 + $0x1e0] sm:$0xff] }
  0x2a   : > { %3594 = vst [vmem:[#allocation20_spill] sm:$0xff] %v1576_v51  ;;  %3595 = vst [vmem:[#allocation21_spill] sm:$0xff] %v1579_v52  ;;  %v1591_v57 = vld [vmem:[%s1426_s28 + $0x1e8] sm:$0xff]  ;;  %v1594_v58 = vld [vmem:[%s1426_s28 + $0x1f0] sm:$0xff] }
  0x2b   : > { %3596 = vst [vmem:[#allocation22_spill] sm:$0xff] %v1588_v56  ;;  %3597 = vst [vmem:[#allocation23_spill] sm:$0xff] %v1591_v57  ;;  %v1597_v59 = vld [vmem:[%s1458_s4 + $0x180] sm:$0xff]  ;;  %v1600_v60 = vld [vmem:[%s1458_s4 + $0x188] sm:$0xff] }
  0x2c   : > { %3598 = vst [vmem:[#allocation24_spill] sm:$0xff] %v1594_v58  ;;  %3599 = vst [vmem:[#allocation25_spill] sm:$0xff] %v1597_v59  ;;  %v1603_v61 = vld [vmem:[%s1458_s4 + $0x190] sm:$0xff]  ;;  %v1614_v54 = vld [vmem:[%s1426_s28 + $0x1f8] sm:$0xff]  ;;  %v1772_v58 = vadd.s32 24, %v1536_v37 }
  0x2d   : > { %3600 = vst [vmem:[#allocation26_spill] sm:$0xff] %v1600_v60  ;;  %3601 = vst [vmem:[#allocation27_spill] sm:$0xff] %v1603_v61  ;;  %v1617_v53 = vld [vmem:[%s1426_s28 + $0x200] sm:$0xff]  ;;  %v1620_v46 = vld [vmem:[%s1426_s28 + $0x208] sm:$0xff] }
  0x2e   : > { %3603 = vst [vmem:[#allocation29_spill] sm:$0xff] %v1614_v54  ;;  %3604 = vst [vmem:[#allocation30_spill] sm:$0xff] %v1617_v53  ;;  %v1623_v62 = vld [vmem:[%s1458_s4 + $0x198] sm:$0xff]  ;;  %v1626_v45 = vld [vmem:[%s1458_s4 + $0x1a0] sm:$0xff] }
  0x2f   : > { %3605 = vst [vmem:[#allocation31_spill] sm:$0xff] %v1620_v46  ;;  %3606 = vst [vmem:[#allocation32_spill] sm:$0xff] %v1623_v62  ;;  %v1629_v63 = vld [vmem:[%s1458_s4 + $0x1a8] sm:$0xff]  ;;  %v1644_v27 = vld [vmem:[%s1426_s28 + $0x210] sm:$0xff]  ;;  %v1799_v46 = vrot.slane %v1641_v34, %v541_v35 }
  0x30   : > { %3607 = vst [vmem:[#allocation33_spill] sm:$0xff] %v1626_v45  ;;  %3608 = vst [vmem:[#allocation34_spill] sm:$0xff] %v1629_v63  ;;  %v1647_v9 = vld [vmem:[%s1426_s28 + $0x218] sm:$0xff]  ;;  %v1650_v26 = vld [vmem:[%s1426_s28 + $0x220] sm:$0xff]  ;;  %v549_v45 = vsub.s32 2, %v1536_v37 }
  0x31   : > { %3609 = vst [vmem:[#allocation35_spill] sm:$0xff] %v1644_v27  ;;  %3610 = vst [vmem:[#allocation36_spill] sm:$0xff] %v1647_v9  ;;  %v1653_v44 = vld [vmem:[%s1458_s4 + $0x1b0] sm:$0xff]  ;;  %v1656_v25 = vld [vmem:[%s1458_s4 + $0x1b8] sm:$0xff] }
  0x32   : > { %3611 = vst [vmem:[#allocation37_spill] sm:$0xff] %v1650_v26  ;;  %3612 = vst [vmem:[#allocation38_spill] sm:$0xff] %v1653_v44  ;;  %v1659_v36 = vld [vmem:[%s1458_s4 + $0x1c0] sm:$0xff]  ;;  %v1669_v59 = vld [vmem:[%s1426_s28 + $0x228] sm:$0xff]  ;;  %v1826_v26 = vrot.slane %v1641_v34, %v545_v20 }
  0x33   : > { %3613 = vst [vmem:[#allocation39_spill] sm:$0xff] %v1656_v25  ;;  %3614 = vst [vmem:[#allocation40_spill] sm:$0xff] %v1659_v36  ;;  %v1672_v19 = vld [vmem:[%s1426_s28 + $0x230] sm:$0xff]  ;;  %v1675_v52 = vld [vmem:[%s1426_s28 + $0x238] sm:$0xff]  ;;  %v1718_v25 = vadd.s32 8, %v1536_v37 }
  0x34   : > { %3615 = vst [vmem:[#allocation41_spill] sm:$0xff] %v1669_v59  ;;  %3616 = vst [vmem:[#allocation42_spill] sm:$0xff] %v1672_v19  ;;  %v1678_v15 = vld [vmem:[%s1458_s4 + $0x1c8] sm:$0xff]  ;;  %v1681_v61 = vld [vmem:[%s1458_s4 + $0x1d0] sm:$0xff] }
  0x35   : > { %3617 = vst [vmem:[#allocation43_spill] sm:$0xff] %v1675_v52  ;;  %3618 = vst [vmem:[#allocation44_spill] sm:$0xff] %v1678_v15  ;;  %v1684_v21 = vld [vmem:[%s1458_s4 + $0x1d8] sm:$0xff]  ;;  %v1694_v29 = vld [vmem:[%s1426_s28 + $0x240] sm:$0xff]  ;;  %v1853_v52 = vrot.slane %v1641_v34, %v549_v45 }
  0x36   : > { %3619 = vst [vmem:[#allocation45_spill] sm:$0xff] %v1681_v61  ;;  %3620 = vst [vmem:[#allocation46_spill] sm:$0xff] %v1684_v21  ;;  %v1697_v62 = vld [vmem:[%s1426_s28 + $0x248] sm:$0xff]  ;;  %v1700_v28 = vld [vmem:[%s1426_s28 + $0x250] sm:$0xff]  ;;  %v1745_v61 = vadd.s32 16, %v1536_v37 }
  0x37   : > { %3621 = vst [vmem:[#allocation47_spill] sm:$0xff] %v1694_v29  ;;  %3622 = vst [vmem:[#allocation48_spill] sm:$0xff] %v1697_v62  ;;  %v1703_v51 = vld [vmem:[%s1458_s4 + $0x1e0] sm:$0xff]  ;;  %v1706_v60 = vld [vmem:[%s1458_s4 + $0x1e8] sm:$0xff] }
  0x38   : > { %3623 = vst [vmem:[#allocation49_spill] sm:$0xff] %v1700_v28  ;;  %3624 = vst [vmem:[#allocation50_spill] sm:$0xff] %v1703_v51  ;;  %v1709_v63 = vld [vmem:[%s1458_s4 + $0x1f0] sm:$0xff]  ;;  %v1721_v39 = vld [vmem:[%s1426_s28 + $0x258] sm:$0xff] }
  0x39   : > { %3625 = vst [vmem:[#allocation51_spill] sm:$0xff] %v1706_v60  ;;  %3626 = vst [vmem:[#allocation52_spill] sm:$0xff] %v1709_v63  ;;  %v1724_v44 = vld [vmem:[%s1426_s28 + $0x260] sm:$0xff]  ;;  %v1727_v38 = vld [vmem:[%s1426_s28 + $0x268] sm:$0xff] }
  0x3a   : > { %3627 = vst [vmem:[#allocation53_spill] sm:$0xff] %v1724_v44  ;;  %3628 = vst [vmem:[#allocation54_spill] sm:$0xff] %v1727_v38  ;;  %v1730_v30 = vld [vmem:[%s1458_s4 + $0x1f8] sm:$0xff]  ;;  %v1733_v15 = vld [vmem:[%s1458_s4 + $0x200] sm:$0xff]  ;;  %v1907_v38 = vadd.s32 96, %v1536_v37 }
  0x3b   : > { %3629 = vst [vmem:[#allocation55_spill] sm:$0xff] %v1730_v30  ;;  %3630 = vst [vmem:[#allocation56_spill] sm:$0xff] %v1733_v15  ;;  %v1736_v36 = vld [vmem:[%s1458_s4 + $0x208] sm:$0xff]  ;;  %v1748_v48 = vld [vmem:[%s1426_s28 + $0x270] sm:$0xff] }
  0x3c   : > { %3631 = vst [vmem:[#allocation57_spill] sm:$0xff] %v1736_v36  ;;  %3632 = vst [vmem:[#allocation58_spill] sm:$0xff] %v1745_v61  ;;  %v1751_v47 = vld [vmem:[%s1426_s28 + $0x278] sm:$0xff]  ;;  %v1754_v14 = vld [vmem:[%s1426_s28 + $0x280] sm:$0xff] }
  0x3d   : > { %3633 = vst [vmem:[#allocation59_spill] sm:$0xff] %v1754_v14  ;;  %v1757_v40 = vld [vmem:[%s1458_s4 + $0x210] sm:$0xff]  ;;  %v1760_v51 = vld [vmem:[%s1458_s4 + $0x218] sm:$0xff]  ;;  %v1763_v21 = vld [vmem:[%s1458_s4 + $0x220] sm:$0xff] }
  0x3e   : > { %3634 = vst [vmem:[#allocation60_spill] sm:$0xff] %v1757_v40  ;;  %3635 = vst [vmem:[#allocation61_spill] sm:$0xff] %v1760_v51  ;;  %v1775_v60 = vld [vmem:[%s1426_s28 + $0x288] sm:$0xff]  ;;  %v1778_v57 = vld [vmem:[%s1426_s28 + $0x290] sm:$0xff] }
  0x3f   : > { %3636 = vst [vmem:[#allocation62_spill] sm:$0xff] %v1763_v21  ;;  %3637 = vst [vmem:[#allocation63_spill] sm:$0xff] %v1772_v58  ;;  %v1781_v56 = vld [vmem:[%s1426_s28 + $0x298] sm:$0xff]  ;;  %v1784_v49 = vld [vmem:[%s1458_s4 + $0x228] sm:$0xff] }
  0x40   : > { %3638 = vst [vmem:[#allocation64_spill] sm:$0xff] %v1778_v57  ;;  %3639 = vst [vmem:[#allocation65_spill] sm:$0xff] %v1781_v56  ;;  %v1787_v30 = vld [vmem:[%s1458_s4 + $0x230] sm:$0xff]  ;;  %v1790_v61 = vld [vmem:[%s1458_s4 + $0x238] sm:$0xff]  ;;  %v3668_v57 = vsub.f32 %v1429_v0, %v1479_v16  ;;  %v3672_v0 = vsub.f32 %v1435_v2, %v1485_v18  ;;  %v3676_v18 = vsub.f32 %v1447_v6, %v1521_v31 }
  0x41   : > { %3640 = vst [vmem:[#allocation66_spill] sm:$0xff] %v1784_v49  ;;  %3641 = vst [vmem:[#allocation67_spill] sm:$0xff] %v1787_v30  ;;  %v1802_v15 = vld [vmem:[%s1426_s28 + $0x2a0] sm:$0xff]  ;;  %v1805_v53 = vld [vmem:[%s1426_s28 + $0x2a8] sm:$0xff]  ;;  %v3681_v31 = vsub.f32 %v1467_v12, %v1555_v43 }
  0x42   : > { %3642 = vst [vmem:[#allocation68_spill] sm:$0xff] %v1790_v61  ;;  %3643 = vst [vmem:[#allocation69_spill] sm:$0xff] %v1799_v46  ;;  %v1808_v54 = vld [vmem:[%s1426_s28 + $0x2b0] sm:$0xff]  ;;  %v1811_v63 = vld [vmem:[%s1458_s4 + $0x240] sm:$0xff]  ;;  %v1995_v45 = vmul.f32 %v1799_v46, %v3668_v57  ;;  %v2017_v16 = vmul.f32 %v1853_v52, %v3672_v0  ;;  %v3673_v57 = vsub.f32 %v1438_v3, %v1497_v22 }
  0x43   : > { %3644 = vst [vmem:[#allocation70_spill] sm:$0xff] %v1808_v54  ;;  %3645 = vst [vmem:[#allocation71_spill] sm:$0xff] %v1811_v63  ;;  %v1814_v40 = vld [vmem:[%s1458_s4 + $0x248] sm:$0xff]  ;;  %v1817_v58 = vld [vmem:[%s1458_s4 + $0x250] sm:$0xff]  ;;  %v2041_v3 = vmul.f32 %v1799_v46, %v3676_v18  ;;  %v3677_v22 = vsub.f32 %v1450_v7, %v1524_v32  ;;  %v3682_v32 = vsub.f32 %v1470_v13, %v1573_v50 }
  0x44   : > { %3646 = vst [vmem:[#allocation72_spill] sm:$0xff] %v1814_v40  ;;  %3647 = vst [vmem:[#allocation73_spill] sm:$0xff] %v1817_v58  ;;  %v1829_v51 = vld [vmem:[%s1426_s28 + $0x2b8] sm:$0xff]  ;;  %v1832_v9 = vld [vmem:[%s1426_s28 + $0x2c0] sm:$0xff]  ;;  %v1880_v58 = vadd.s32 88, %v1536_v37 }
  0x45   : > { %3648 = vst [vmem:[#allocation74_spill] sm:$0xff] %v1826_v26  ;;  %v1835_v27 = vld [vmem:[%s1426_s28 + $0x2c8] sm:$0xff]  ;;  %v1838_v36 = vld [vmem:[%s1458_s4 + $0x258] sm:$0xff]  ;;  %v1841_v49 = vld [vmem:[%s1458_s4 + $0x260] sm:$0xff] }
  0x46   : > { %3649 = vst [vmem:[#allocation75_spill] sm:$0xff] %v1835_v27  ;;  %3650 = vst [vmem:[#allocation76_spill] sm:$0xff] %v1838_v36  ;;  %v1844_v35 = vld [vmem:[%s1458_s4 + $0x268] sm:$0xff]  ;;  %v1856_v30 = vld [vmem:[%s1426_s28 + $0x2d0] sm:$0xff]  ;;  %v3671_v27 = vsub.f32 %v1432_v1, %v1482_v17  ;;  %v3675_v17 = vsub.f32 %v1444_v5, %v1503_v24  ;;  %v3679_v24 = vsub.f32 %v1461_v10, %v1549_v41 }
  0x47   : > { %3651 = vst [vmem:[#allocation77_spill] sm:$0xff] %v1841_v49  ;;  %3652 = vst [vmem:[#allocation78_spill] sm:$0xff] %v1844_v35  ;;  %v1859_v19 = vld [vmem:[%s1426_s28 + $0x2d8] sm:$0xff]  ;;  %v1862_v59 = vld [vmem:[%s1426_s28 + $0x2e0] sm:$0xff]  ;;  %v1962_v35 = vadd.s32 112, %v1536_v37  ;;  %v2077_v10 = vmul.f32 %v1799_v46, %v3682_v32 }
  0x48   : > { %3653 = vst [vmem:[#allocation79_spill] sm:$0xff] %v1853_v52  ;;  %v1865_v21 = vld [vmem:[%s1458_s4 + $0x270] sm:$0xff]  ;;  %v1868_v63 = vld [vmem:[%s1458_s4 + $0x278] sm:$0xff]  ;;  %v1871_v20 = vld [vmem:[%s1458_s4 + $0x280] sm:$0xff]  ;;  %v2035_v2 = vmul.f32 %v1853_v52, %v3675_v17  ;;  %v2059_v6 = vmul.f32 %v1799_v46, %v3679_v24 }
  0x49   : > { %3654 = vst [vmem:[#allocation80_spill] sm:$0xff] %v1868_v63  ;;  %3655 = vst [vmem:[#allocation81_spill] sm:$0xff] %v1871_v20  ;;  %v1883_v28 = vld [vmem:[%s1426_s28 + $0x2e8] sm:$0xff]  ;;  %v1886_v40 = vld [vmem:[%s1426_s28 + $0x2f0] sm:$0xff] }
  0x4a   : > { %3656 = vst [vmem:[#allocation82_spill] sm:$0xff] %v1880_v58  ;;  %v1889_v62 = vld [vmem:[%s1426_s28 + $0x2f8] sm:$0xff]  ;;  %v1892_v29 = vld [vmem:[%s1458_s4 + $0x288] sm:$0xff]  ;;  %v1895_v61 = vld [vmem:[%s1458_s4 + $0x290] sm:$0xff]  ;;  %v1980_v58 = vadd.s32 120, %v1536_v37 }
  0x4b   : > { %3657 = vst [vmem:[#allocation83_spill] sm:$0xff] %v1895_v61  ;;  %v1898_v34 = vld [vmem:[%s1458_s4 + $0x298] sm:$0xff]  ;;  %3659 = vst [vmem:[#allocation85_spill] sm:$0xff] %v1907_v38  ;;  %v1910_v49 = vld [vmem:[%s1458_s4 + $0x2a0] sm:$0xff]  ;;  %v1925_v38 = vadd.s32 104, %v1536_v37 }
  0x4c   : > { %3658 = vst [vmem:[#allocation84_spill] sm:$0xff] %v1898_v34  ;;  %v1913_v44 = vld [vmem:[%s1458_s4 + $0x2a8] sm:$0xff]  ;;  %v1916_v36 = vld [vmem:[%s1458_s4 + $0x2b0] sm:$0xff]  ;;  %v1928_v20 = vld [vmem:[%s1458_s4 + $0x2b8] sm:$0xff] }
  0x4d   : > { %3660 = vst [vmem:[#allocation86_spill] sm:$0xff] %v1913_v44  ;;  %3661 = vst [vmem:[#allocation87_spill] sm:$0xff] %v1916_v36  ;;  %v1931_v14 = vld [vmem:[%s1458_s4 + $0x2c0] sm:$0xff]  ;;  %v1934_v63 = vld [vmem:[%s1458_s4 + $0x2c8] sm:$0xff]  ;;  %v1989_v44 = vadd.s32 128, %v1536_v37 }
  0x4e   : > { %3662 = vst [vmem:[#allocation88_spill] sm:$0xff] %v1925_v38  ;;  %3663 = vst [vmem:[#allocation89_spill] sm:$0xff] %v1934_v63  ;;  %v1944_v38 = vadd.s32 %v1611_v55, %v1536_v37  ;;  %v1947_v34 = vld [vmem:[%s1458_s4 + $0x2d0] sm:$0xff]  ;;  %v1950_v56 = vld [vmem:[%s1458_s4 + $0x2d8] sm:$0xff]  ;;  %v2005_v63 = vadd.s32 %v1611_v55, %v1718_v25  ;;  %v3674_v25 = vsub.f32 %v1441_v4, %v1500_v23 }
  0x4f   : > { %v1953_v61 = vld [vmem:[%s1458_s4 + $0x2e0] sm:$0xff]  ;;  %3665 = vst [vmem:[#allocation91_spill] sm:$0xff] %v1962_v35  ;;  %v1965_v36 = vld [vmem:[%s1458_s4 + $0x2e8] sm:$0xff]  ;;  %v1971_v54 = vld [vmem:[%s1458_s4 + $0x2f8] sm:$0xff]  ;;  %v2001_v35 = vadd.s32 144, %v1536_v37  ;;  %v2047_v4 = vmul.f32 %v1826_v26, %v3677_v22  ;;  %v3678_v23 = vsub.f32 %v1453_v8, %v1527_v33  ;;  %v2071_v8 = vmul.f32 %v1853_v52, %v3681_v31 }
  0x50   : > { %3664 = vst [vmem:[#allocation90_spill] sm:$0xff] %v1944_v38  ;;  %v1968_v38 = vld [vmem:[%s1458_s4 + $0x2f0] sm:$0xff]  ;;  %3666 = vst [vmem:[#allocation92_spill] sm:$0xff] %v1980_v58  ;;  %v1998_v58 = vadd.s32 136, %v1536_v37  ;;  %v2029_v1 = vmul.f32 %v1826_v26, %v3674_v25  ;;  %v3684_v41 = vld [vmem:[#allocation20_spill] sm:$0xff] }
  0x51   : > { %3667 = vst [vmem:[#allocation93_spill] sm:$0xff] %v1989_v44  ;;  %3669 = vst [vmem:[#allocation94_spill] sm:$0xff] %v1995_v45  ;;  %v2011_v44 = vmul.f32 %v1826_v26, %v3671_v27  ;;  %v2023_v45 = vmul.f32 %v1799_v46, %v3673_v57  ;;  %v2053_v5 = vmul.f32 %v1853_v52, %v3678_v23  ;;  %v3683_v33 = vld [vmem:[#allocation5_spill] sm:$0xff]  ;;  %v3689_v43 = vld [vmem:[#allocation7_spill] sm:$0xff] }
  0x52   : > { %3670 = vst [vmem:[#allocation95_spill] sm:$0xff] %v2005_v63  ;;  %v3680_v27 = vsub.f32 %v1464_v11, %v1552_v42  ;;  %v3685_v0 = vsub.f32 %v3683_v33, %v3684_v41  ;;  %v3686_v42 = vld [vmem:[#allocation6_spill] sm:$0xff]  ;;  %v3687_v57 = vld [vmem:[#allocation21_spill] sm:$0xff]  ;;  %v3692_v50 = vld [vmem:[#allocation8_spill] sm:$0xff] }
  0x53   : > { %v3688_v25 = vsub.f32 %v3686_v42, %v3687_v57  ;;  %v3690_v17 = vld [vmem:[#allocation25_spill] sm:$0xff]  ;;  %v3693_v22 = vld [vmem:[#allocation26_spill] sm:$0xff]  ;;  %v3696_v31 = vld [vmem:[#allocation27_spill] sm:$0xff] }
  0x54   : > { %v2065_v7 = vmul.f32 %v1826_v26, %v3680_v27  ;;  %v2083_v11 = vmul.f32 %v1826_v26, %v3685_v0  ;;  %v3691_v18 = vsub.f32 %v3689_v43, %v3690_v17  ;;  %v3694_v23 = vsub.f32 %v3692_v50, %v3693_v22  ;;  %v3695_v27 = vld [vmem:[#allocation9_spill] sm:$0xff]  ;;  %v3698_v41 = vld [vmem:[#allocation10_spill] sm:$0xff]  ;;  %v3699_v0 = vld [vmem:[#allocation32_spill] sm:$0xff] }
  0x55   : > { %v2089_v12 = vmul.f32 %v1853_v52, %v3688_v25  ;;  %v3697_v32 = vsub.f32 %v3695_v27, %v3696_v31  ;;  %v3700_v42 = vsub.f32 %v3698_v41, %v3699_v0  ;;  %v3702_v25 = vld [vmem:[#allocation11_spill] sm:$0xff]  ;;  %v3703_v43 = vld [vmem:[#allocation33_spill] sm:$0xff]  ;;  %v3706_v50 = vld [vmem:[#allocation12_spill] sm:$0xff] }
  0x56   : > { %v2095_v13 = vmul.f32 %v1799_v46, %v3691_v18  ;;  %v2101_v24 = vmul.f32 %v1826_v26, %v3694_v23  ;;  %v3704_v17 = vsub.f32 %v3702_v25, %v3703_v43  ;;  %v3707_v22 = vld [vmem:[#allocation34_spill] sm:$0xff]  ;;  %v3714_v0 = vld [vmem:[#allocation15_spill] sm:$0xff]  ;;  %v3718_v43 = vld [vmem:[#allocation16_spill] sm:$0xff] }
  0x57   : > { %v2107_v33 = vmul.f32 %v1853_v52, %v3697_v32  ;;  %v2113_v57 = vmul.f32 %v1799_v46, %v3700_v42  ;;  %v3708_v23 = vsub.f32 %v3706_v50, %v3707_v22  ;;  %v3710_v31 = vld [vmem:[#allocation14_spill] sm:$0xff]  ;;  %v3715_v42 = vld [vmem:[#allocation39_spill] sm:$0xff]  ;;  %v3722_v22 = vld [vmem:[#allocation17_spill] sm:$0xff] }
  0x58   : > { %v2119_v18 = vmul.f32 %v1826_v26, %v3704_v17  ;;  %v3711_v32 = vld [vmem:[#allocation38_spill] sm:$0xff]  ;;  %v3719_v17 = vld [vmem:[#allocation40_spill] sm:$0xff] }
  0x59   : > { %3701 = vst [vmem:[#allocation5_spill] sm:$0xff] %v2113_v57  ;;  %v2125_v27 = vmul.f32 %v1853_v52, %v3708_v23  ;;  %v3712_v63 = vsub.f32 %v3710_v31, %v3711_v32  ;;  %v3716_v57 = vsub.f32 %v3714_v0, %v3715_v42  ;;  %v3723_v23 = vld [vmem:[#allocation44_spill] sm:$0xff]  ;;  %v3727_v32 = vld [vmem:[#allocation45_spill] sm:$0xff]  ;;  %v3731_v42 = vld [vmem:[#allocation46_spill] sm:$0xff] }
  0x5a   : > { %3705 = vst [vmem:[#allocation20_spill] sm:$0xff] %v2119_v18  ;;  %v3720_v18 = vsub.f32 %v3718_v43, %v3719_v17  ;;  %v3735_v17 = vld [vmem:[#allocation50_spill] sm:$0xff] }
  0x5b   : > { %3709 = vst [vmem:[#allocation6_spill] sm:$0xff] %v2125_v27  ;;  %v2131_v41 = vmul.f32 %v1799_v46, %v3712_v63  ;;  %v2137_v25 = vmul.f32 %v1826_v26, %v3716_v57  ;;  %v3724_v27 = vsub.f32 %v3722_v22, %v3723_v23  ;;  %v3726_v63 = vld [vmem:[#allocation18_spill] sm:$0xff]  ;;  %v3730_v57 = vld [vmem:[#allocation19_spill] sm:$0xff] }
  0x5c   : > { %v2143_v50 = vmul.f32 %v1853_v52, %v3720_v18  ;;  %v3734_v18 = vld [vmem:[#allocation22_spill] sm:$0xff]  ;;  %v3739_v23 = vld [vmem:[#allocation51_spill] sm:$0xff] }
  0x5d   : > { %3713 = vst [vmem:[#allocation21_spill] sm:$0xff] %v2131_v41  ;;  %3717 = vst [vmem:[#allocation7_spill] sm:$0xff] %v2137_v25  ;;  %v2149_v31 = vmul.f32 %v1799_v46, %v3724_v27  ;;  %v3728_v41 = vsub.f32 %v3726_v63, %v3727_v32  ;;  %v3732_v25 = vsub.f32 %v3730_v57, %v3731_v42  ;;  %v3738_v27 = vld [vmem:[#allocation23_spill] sm:$0xff]  ;;  %v3743_v32 = vld [vmem:[#allocation52_spill] sm:$0xff] }
  0x5e   : > { %3721 = vst [vmem:[#allocation25_spill] sm:$0xff] %v2143_v50  ;;  %v3736_v50 = vsub.f32 %v3734_v18, %v3735_v17  ;;  %v3747_v42 = vld [vmem:[#allocation55_spill] sm:$0xff]  ;;  %v3751_v17 = vld [vmem:[#allocation56_spill] sm:$0xff] }
  0x5f   : > { %3725 = vst [vmem:[#allocation8_spill] sm:$0xff] %v2149_v31  ;;  %v2155_v0 = vmul.f32 %v1826_v26, %v3728_v41  ;;  %v2161_v43 = vmul.f32 %v1853_v52, %v3732_v25  ;;  %v3740_v31 = vsub.f32 %v3738_v27, %v3739_v23  ;;  %v3742_v41 = vld [vmem:[#allocation24_spill] sm:$0xff]  ;;  %v3746_v25 = vld [vmem:[#allocation29_spill] sm:$0xff] }
  0x60   : > { %v2167_v22 = vmul.f32 %v1799_v46, %v3736_v50  ;;  %v3750_v50 = vld [vmem:[#allocation30_spill] sm:$0xff]  ;;  %v3755_v23 = vld [vmem:[#allocation57_spill] sm:$0xff] }
  0x61   : > { %3729 = vst [vmem:[#allocation26_spill] sm:$0xff] %v2155_v0  ;;  %3733 = vst [vmem:[#allocation9_spill] sm:$0xff] %v2161_v43  ;;  %v2173_v63 = vmul.f32 %v1826_v26, %v3740_v31  ;;  %v3744_v0 = vsub.f32 %v3742_v41, %v3743_v32  ;;  %v3748_v43 = vsub.f32 %v3746_v25, %v3747_v42  ;;  %v3754_v31 = vld [vmem:[#allocation31_spill] sm:$0xff]  ;;  %v3759_v32 = vld [vmem:[#allocation60_spill] sm:$0xff] }
  0x62   : > { %3737 = vst [vmem:[#allocation27_spill] sm:$0xff] %v2167_v22  ;;  %v3752_v22 = vsub.f32 %v3750_v50, %v3751_v17  ;;  %v3763_v42 = vld [vmem:[#allocation61_spill] sm:$0xff]  ;;  %v3767_v17 = vld [vmem:[#allocation62_spill] sm:$0xff] }
  0x63   : > { %3741 = vst [vmem:[#allocation10_spill] sm:$0xff] %v2173_v63  ;;  %v2179_v57 = vmul.f32 %v1853_v52, %v3744_v0  ;;  %v2185_v18 = vmul.f32 %v1799_v46, %v3748_v43  ;;  %v3756_v63 = vsub.f32 %v3754_v31, %v3755_v23  ;;  %v3758_v0 = vld [vmem:[#allocation35_spill] sm:$0xff]  ;;  %v3762_v43 = vld [vmem:[#allocation36_spill] sm:$0xff]  ;;  %v3771_v23 = vld [vmem:[#allocation66_spill] sm:$0xff] }
  0x64   : > { %v2191_v27 = vmul.f32 %v1826_v26, %v3752_v22  ;;  %v3766_v22 = vld [vmem:[#allocation37_spill] sm:$0xff] }
  0x65   : > { %3745 = vst [vmem:[#allocation32_spill] sm:$0xff] %v2179_v57  ;;  %3749 = vst [vmem:[#allocation11_spill] sm:$0xff] %v2185_v18  ;;  %v2197_v41 = vmul.f32 %v1853_v52, %v3756_v63  ;;  %v3760_v57 = vsub.f32 %v3758_v0, %v3759_v32  ;;  %v3764_v18 = vsub.f32 %v3762_v43, %v3763_v42  ;;  %v3770_v63 = vld [vmem:[#allocation41_spill] sm:$0xff]  ;;  %v3775_v32 = vld [vmem:[#allocation67_spill] sm:$0xff] }
  0x66   : > { %3753 = vst [vmem:[#allocation33_spill] sm:$0xff] %v2191_v27  ;;  %v3768_v27 = vsub.f32 %v3766_v22, %v3767_v17  ;;  %v3779_v42 = vld [vmem:[#allocation68_spill] sm:$0xff]  ;;  %v3783_v17 = vld [vmem:[#allocation71_spill] sm:$0xff] }
  0x67   : > { %3757 = vst [vmem:[#allocation12_spill] sm:$0xff] %v2197_v41  ;;  %v2203_v25 = vmul.f32 %v1799_v46, %v3760_v57  ;;  %v2209_v50 = vmul.f32 %v1826_v26, %v3764_v18  ;;  %v3772_v41 = vsub.f32 %v3770_v63, %v3771_v23  ;;  %v3774_v57 = vld [vmem:[#allocation42_spill] sm:$0xff]  ;;  %v3778_v18 = vld [vmem:[#allocation43_spill] sm:$0xff]  ;;  %v3787_v23 = vld [vmem:[#allocation72_spill] sm:$0xff] }
  0x68   : > { %v2215_v31 = vmul.f32 %v1853_v52, %v3768_v27  ;;  %v3782_v27 = vld [vmem:[#allocation47_spill] sm:$0xff] }
  0x69   : > { %3761 = vst [vmem:[#allocation34_spill] sm:$0xff] %v2203_v25  ;;  %3765 = vst [vmem:[#allocation14_spill] sm:$0xff] %v2209_v50  ;;  %v2221_v0 = vmul.f32 %v1799_v46, %v3772_v41  ;;  %v3776_v25 = vsub.f32 %v3774_v57, %v3775_v32  ;;  %v3780_v50 = vsub.f32 %v3778_v18, %v3779_v42  ;;  %v3786_v41 = vld [vmem:[#allocation48_spill] sm:$0xff]  ;;  %v3791_v32 = vld [vmem:[#allocation73_spill] sm:$0xff] }
  0x6a   : > { %3769 = vst [vmem:[#allocation38_spill] sm:$0xff] %v2215_v31  ;;  %v3784_v31 = vsub.f32 %v3782_v27, %v3783_v17  ;;  %v3798_v17 = vld [vmem:[#allocation77_spill] sm:$0xff] }
  0x6b   : > { %3773 = vst [vmem:[#allocation15_spill] sm:$0xff] %v2221_v0  ;;  %v2227_v43 = vmul.f32 %v1826_v26, %v3776_v25  ;;  %v2233_v22 = vmul.f32 %v1853_v52, %v3780_v50  ;;  %v3788_v0 = vsub.f32 %v3786_v41, %v3787_v23  ;;  %v3790_v25 = vld [vmem:[#allocation49_spill] sm:$0xff]  ;;  %v3794_v50 = vld [vmem:[#allocation76_spill] sm:$0xff]  ;;  %v3802_v23 = vld [vmem:[#allocation78_spill] sm:$0xff] }
  0x6c   : > { %v2239_v63 = vmul.f32 %v1799_v46, %v3784_v31  ;;  %v3795_v42 = vsub.f32 %v1721_v39, %v3794_v50  ;;  %v3797_v31 = vld [vmem:[#allocation53_spill] sm:$0xff] }
  0x6d   : > { %3777 = vst [vmem:[#allocation39_spill] sm:$0xff] %v2227_v43  ;;  %3781 = vst [vmem:[#allocation16_spill] sm:$0xff] %v2233_v22  ;;  %v2245_v57 = vmul.f32 %v1826_v26, %v3788_v0  ;;  %v3792_v43 = vsub.f32 %v3790_v25, %v3791_v32  ;;  %v3801_v0 = vld [vmem:[#allocation54_spill] sm:$0xff]  ;;  %v3807_v32 = vld [vmem:[#allocation80_spill] sm:$0xff] }
  0x6e   : > { %3785 = vst [vmem:[#allocation40_spill] sm:$0xff] %v2239_v63  ;;  %v2257_v27 = vmul.f32 %v1799_v46, %v3795_v42  ;;  %v3799_v63 = vsub.f32 %v3797_v31, %v3798_v17  ;;  %v3808_v50 = vsub.f32 %v1751_v47, %v3807_v32  ;;  %v3811_v31 = vld [vmem:[#allocation81_spill] sm:$0xff]  ;;  %v258_v22 = vld [vmem:[%s1426_s28 + $0x40] sm:$0xff] }
  0x6f   : > { %3789 = vst [vmem:[#allocation17_spill] sm:$0xff] %v2245_v57  ;;  %v2251_v18 = vmul.f32 %v1853_v52, %v3792_v43  ;;  %v3803_v57 = vsub.f32 %v3801_v0, %v3802_v23  ;;  %v3805_v43 = vsub.f32 %v1748_v48, %v1865_v21  ;;  %v3816_v48 = vld [vmem:[#allocation64_spill] sm:$0xff]  ;;  %v3817_v23 = vld [vmem:[#allocation83_spill] sm:$0xff]  ;;  %v3820_v32 = vld [vmem:[#allocation65_spill] sm:$0xff] }
  0x70   : > { %3796 = vst [vmem:[#allocation18_spill] sm:$0xff] %v2257_v27  ;;  %v2263_v41 = vmul.f32 %v1826_v26, %v3799_v63  ;;  %v2281_v42 = vmul.f32 %v1826_v26, %v3808_v50  ;;  %v3810_v63 = vld [vmem:[#allocation59_spill] sm:$0xff]  ;;  %v3821_v50 = vld [vmem:[#allocation84_spill] sm:$0xff] }
  0x71   : > { %3793 = vst [vmem:[#allocation44_spill] sm:$0xff] %v2251_v18  ;;  %v2269_v25 = vmul.f32 %v1853_v52, %v3803_v57  ;;  %v2275_v39 = vmul.f32 %v1799_v46, %v3805_v43  ;;  %v3812_v17 = vsub.f32 %v3810_v63, %v3811_v31  ;;  %v3814_v57 = vsub.f32 %v1775_v60, %v1892_v29  ;;  %v3826_v60 = vld [vmem:[#allocation86_spill] sm:$0xff] }
  0x72   : > { %3800 = vst [vmem:[#allocation45_spill] sm:$0xff] %v2263_v41  ;;  %3809 = vst [vmem:[#allocation22_spill] sm:$0xff] %v2281_v42  ;;  %v3818_v43 = vsub.f32 %v3816_v48, %v3817_v23  ;;  %v3822_v42 = vsub.f32 %v3820_v32, %v3821_v50  ;;  %v3824_v31 = vsub.f32 %v1802_v15, %v1910_v49  ;;  %v3829_v48 = vld [vmem:[#allocation70_spill] sm:$0xff]  ;;  %v3830_v23 = vld [vmem:[#allocation87_spill] sm:$0xff] }
  0x73   : > { %3804 = vst [vmem:[#allocation19_spill] sm:$0xff] %v2269_v25  ;;  %3806 = vst [vmem:[#allocation46_spill] sm:$0xff] %v2275_v39  ;;  %v2287_v0 = vmul.f32 %v1853_v52, %v3812_v17  ;;  %v2293_v21 = vmul.f32 %v1799_v46, %v3814_v57  ;;  %v3827_v17 = vsub.f32 %v1805_v53, %v3826_v60  ;;  %v3837_v50 = vld [vmem:[#allocation75_spill] sm:$0xff]  ;;  %v3864_v39 = vld [vmem:[#allocation93_spill] sm:$0xff] }
  0x74   : > { %v2299_v47 = vmul.f32 %v1826_v26, %v3818_v43  ;;  %v2305_v63 = vmul.f32 %v1853_v52, %v3822_v42  ;;  %v2311_v29 = vmul.f32 %v1799_v46, %v3824_v31  ;;  %v3831_v43 = vsub.f32 %v3829_v48, %v3830_v23  ;;  %v3838_v31 = vld [vmem:[#allocation89_spill] sm:$0xff]  ;;  %v257_v41 = vld [vmem:[%s1426_s28 + $0x38] sm:$0xff] }
  0x75   : > { %3813 = vst [vmem:[#allocation50_spill] sm:$0xff] %v2287_v0  ;;  %3815 = vst [vmem:[#allocation23_spill] sm:$0xff] %v2293_v21  ;;  %v2317_v57 = vmul.f32 %v1826_v26, %v3827_v17  ;;  %v3833_v42 = vsub.f32 %v1829_v51, %v1928_v20  ;;  %v3835_v49 = vsub.f32 %v1832_v9, %v1931_v14  ;;  %v3862_v0 = vld [vmem:[#allocation92_spill] sm:$0xff]  ;;  %v256_v25 = vld [vmem:[%s1426_s28 + $0x30] sm:$0xff] }
  0x76   : > { %3819 = vst [vmem:[#allocation51_spill] sm:$0xff] %v2299_v47  ;;  %3823 = vst [vmem:[#allocation24_spill] sm:$0xff] %v2305_v63  ;;  %v2323_v32 = vmul.f32 %v1853_v52, %v3831_v43  ;;  %v3839_v60 = vsub.f32 %v3837_v50, %v3838_v31  ;;  %v3841_v48 = vsub.f32 %v1856_v30, %v1947_v34  ;;  %v252_v50 = vld [vmem:[%s1426_s28 + $0x10] sm:$0xff]  ;;  %v253_v31 = vld [vmem:[%s1426_s28 + $0x18] sm:$0xff] }
  0x77   : > { %3825 = vst [vmem:[#allocation52_spill] sm:$0xff] %v2311_v29  ;;  %3828 = vst [vmem:[#allocation29_spill] sm:$0xff] %v2317_v57  ;;  %v2329_v15 = vmul.f32 %v1799_v46, %v3833_v42  ;;  %v2335_v53 = vmul.f32 %v1826_v26, %v3835_v49  ;;  %v3843_v9 = vsub.f32 %v1859_v19, %v1950_v56  ;;  %v3853_v42 = vld [vmem:[#allocation58_spill] sm:$0xff]  ;;  %v768_v49 = vadd.s32 168, %v1536_v37  ;;  %v3858_v29 = vld [vmem:[#allocation85_spill] sm:$0xff] }
  0x78   : > { %3832 = vst [vmem:[#allocation55_spill] sm:$0xff] %v2323_v32  ;;  %v2341_v17 = vmul.f32 %v1853_v52, %v3839_v60  ;;  %v2347_v51 = vmul.f32 %v1799_v46, %v3841_v48  ;;  %v3845_v20 = vsub.f32 %v1862_v59, %v1953_v61  ;;  %v3847_v30 = vsub.f32 %v1883_v28, %v1965_v36  ;;  %v250_v36 = vld [vmem:[%s1426_s28] sm:$0xff]  ;;  %v255_v48 = vld [vmem:[%s1426_s28 + $0x28] sm:$0xff]  ;;  %v3857_v32 = vld [vmem:[#allocation82_spill] sm:$0xff] }
  0x79   : > { %3834 = vst [vmem:[#allocation30_spill] sm:$0xff] %v2329_v15  ;;  %3836 = vst [vmem:[#allocation56_spill] sm:$0xff] %v2335_v53  ;;  %v2353_v14 = vmul.f32 %v1826_v26, %v3843_v9  ;;  %v3849_v19 = vsub.f32 %v1886_v40, %v1968_v38  ;;  %v3851_v43 = vsub.f32 %v1889_v62, %v1971_v54  ;;  %v766_v61 = vadd.s32 152, %v1536_v37  ;;  %v251_v38 = vld [vmem:[%s1426_s28 + $0x8] sm:$0xff]  ;;  %v254_v60 = vld [vmem:[%s1426_s28 + $0x20] sm:$0xff] }
  0x7a   : > { %3840 = vst [vmem:[#allocation31_spill] sm:$0xff] %v2341_v17  ;;  %3842 = vst [vmem:[#allocation57_spill] sm:$0xff] %v2347_v51  ;;  %v2359_v23 = vmul.f32 %v1853_v52, %v3845_v20  ;;  %v2365_v34 = vmul.f32 %v1799_v46, %v3847_v30  ;;  %v2382_v28 = vadd.s32 %v1611_v55, %v3853_v42  ;;  %v767_v40 = vadd.s32 160, %v1536_v37  ;;  %v347_v42 = vld [vmem:[%s1458_s4 + $0x8] sm:$0xff]  ;;  %v349_v51 = vld [vmem:[%s1458_s4 + $0x18] sm:$0xff] }
  0x7b   : > { %3844 = vst [vmem:[#allocation35_spill] sm:$0xff] %v2353_v14  ;;  %v2371_v56 = vmul.f32 %v1826_v26, %v3849_v19  ;;  %v2377_v59 = vmul.f32 %v1853_v52, %v3851_v43  ;;  %v769_v54 = vadd.s32 176, %v1536_v37  ;;  %v770_v62 = vadd.s32 184, %v1536_v37  ;;  %v346_v43 = vld [vmem:[%s1458_s4] sm:$0xff]  ;;  %v351_v53 = vld [vmem:[%s1458_s4 + $0x28] sm:$0xff] }
  0x7c   : > { %3846 = vst [vmem:[#allocation60_spill] sm:$0xff] %v2359_v23  ;;  %3848 = vst [vmem:[#allocation36_spill] sm:$0xff] %v2365_v34  ;;  %v771_v9 = vadd.s32 192, %v1536_v37  ;;  %v772_v20 = vadd.s32 200, %v1536_v37  ;;  %v773_v30 = vadd.s32 208, %v1536_v37  ;;  %v774_v19 = vadd.s32 216, %v1536_v37 }
  0x7d   : > { %3850 = vst [vmem:[#allocation61_spill] sm:$0xff] %v2371_v56  ;;  %3852 = vst [vmem:[#allocation37_spill] sm:$0xff] %v2377_v59  ;;  %v775_v59 = vadd.s32 224, %v1536_v37  ;;  %v776_v56 = vadd.s32 232, %v1536_v37  ;;  %v777_v34 = vadd.s32 240, %v1536_v37  ;;  %v3855_v23 = vld [vmem:[#allocation63_spill] sm:$0xff]  ;;  %v2414_v57 = vadd.s32 %v1611_v55, %v3857_v32 }
  0x7e   : > { %3854 = vst [vmem:[#allocation62_spill] sm:$0xff] %v2382_v28  ;;  %v348_v28 = vld [vmem:[%s1458_s4 + $0x10] sm:$0xff]  ;;  %v2406_v14 = vadd.s32 %v1611_v55, %v3855_v23  ;;  %v350_v17 = vld [vmem:[%s1458_s4 + $0x20] sm:$0xff]  ;;  %v778_v15 = vadd.s32 248, %v1536_v37  ;;  %v2418_v63 = vadd.s32 %v1611_v55, %v3858_v29  ;;  %v3859_v47 = vld [vmem:[#allocation88_spill] sm:$0xff]  ;;  %v2430_v37 = vadd.s32 %v1611_v55, %v3862_v0 }
  0x7f   : > { %v2422_v23 = vadd.s32 %v1611_v55, %v3859_v47  ;;  %v2434_v32 = vadd.s32 %v1611_v55, %v3864_v39  ;;  %v2438_v29 = vadd.s32 %v1611_v55, %v1998_v58  ;;  %v352_v47 = vld [vmem:[%s1458_s4 + $0x30] sm:$0xff]  ;;  %v442_v27 = vsub.f32 %v250_v36, %v346_v43  ;;  %v353_v39 = vld [vmem:[%s1458_s4 + $0x38] sm:$0xff]  ;;  %v2466_v43 = vld [vmem:[%s1426_s28 + $0x48] sm:$0xff] }
  0x80   : > { %3856 = vst [vmem:[#allocation41_spill] sm:$0xff] %v2406_v14  ;;  %v3860_v14 = vld [vmem:[#allocation91_spill] sm:$0xff]  ;;  %3863 = vst [vmem:[#allocation42_spill] sm:$0xff] %v2430_v37  ;;  %v443_v18 = vsub.f32 %v251_v38, %v347_v42  ;;  %v2448_v0 = vadd.s32 %v1611_v55, %v766_v61  ;;  %v444_v58 = vsub.f32 %v252_v50, %v348_v28  ;;  %vm824_vm1 = vcmp.lt.s32.totalorder %v2414_v57, 500 }
  0x81   : > { %v2426_v21 = vadd.s32 %v1611_v55, %v3860_v14  ;;  %3865 = vst [vmem:[#allocation67_spill] sm:$0xff] %v2434_v32  ;;  %3866 = vst [vmem:[#allocation43_spill] sm:$0xff] %v2438_v29  ;;  %v2445_v14 = vadd.s32 %v1611_v55, %v2001_v35  ;;  %v354_v32 = vld [vmem:[%s1458_s4 + $0x40] sm:$0xff]  ;;  %v445_v29 = vsub.f32 %v253_v31, %v349_v51  ;;  %v2478_v51 = vld [vmem:[%s1426_s28 + $0x58] sm:$0xff]  ;;  %vm825_vm2 = vcmp.lt.s32.totalorder %v2418_v63, 500 }
  0x82   : > { %v446_v37 = vsub.f32 %v254_v60, %v350_v17  ;;  %v2454_v36 = vadd.s32 %v1611_v55, %v767_v40  ;;  %v2457_v38 = vadd.s32 %v1611_v55, %v768_v49  ;;  %v2460_v35 = vadd.s32 %v1611_v55, %v769_v54  ;;  %3867 = vst [vmem:[#allocation68_spill] sm:$0xff] %v2466_v43  ;;  %v2481_v40 = vld [vmem:[%s1458_s4 + $0x48] sm:$0xff]  ;;  %v2484_v49 = vld [vmem:[%s1458_s4 + $0x58] sm:$0xff] }
  0x83   : > { %3861 = vst [vmem:[#allocation66_spill] sm:$0xff] %v2426_v21  ;;  %v447_v21 = vsub.f32 %v255_v48, %v351_v53  ;;  %v2463_v61 = vadd.s32 %v1611_v55, %v770_v62  ;;  %v448_v42 = vsub.f32 %v256_v25, %v352_v47  ;;  %v2469_v28 = vadd.s32 %v1611_v55, %v771_v9 }
  0x84   : > { %v2472_v53 = vadd.s32 %v1611_v55, %v772_v20  ;;  %v2475_v17 = vadd.s32 %v1611_v55, %v773_v30  ;;  %3868 = vst [vmem:[#allocation47_spill] sm:$0xff] %v2478_v51  ;;  %3869 = vst [vmem:[#allocation71_spill] sm:$0xff] %v2481_v40  ;;  %v449_v54 = vsub.f32 %v257_v41, %v353_v39  ;;  %vm826_vm4 = vcmp.lt.s32.totalorder %v2422_v23, 500  ;;  %v3898_v51 = vld [vmem:[#allocation12_spill] sm:$0xff]  ;;  %v3904_v40 = vld [vmem:[#allocation38_spill] sm:$0xff] }
  0x85   : > { %3870 = vst [vmem:[#allocation48_spill] sm:$0xff] %v2484_v49  ;;  %v450_v62 = vsub.f32 %v258_v22, %v354_v32  ;;  %v554_v50 = vmul.f32 %v1799_v46, %v442_v27  ;;  %v555_v25 = vmul.f32 %v1826_v26, %v443_v18  ;;  %v556_v31 = vmul.f32 %v1853_v52, %v444_v58 }
  0x86   : > { %v557_v60 = vmul.f32 %v1799_v46, %v445_v29  ;;  %v558_v48 = vmul.f32 %v1826_v26, %v446_v37  ;;  %v559_v9 = vmul.f32 %v1853_v52, %v447_v21  ;;  %v2493_v20 = vadd.s32 %v1611_v55, %v774_v19 }
  0x87   : > { %v2496_v30 = vadd.s32 %v1611_v55, %v775_v59  ;;  %v2499_v22 = vadd.s32 %v1611_v55, %v776_v56  ;;  %v2502_v27 = vadd.s32 %v1611_v55, %v777_v34  ;;  %v2509_v41 = vmul.f32 %v1799_v46, %v448_v42  ;;  %v3902_v46 = vld [vmem:[#allocation14_spill] sm:$0xff] }
  0x88   : > { %v2512_v21 = vadd.s32 %v1611_v55, %v778_v15  ;;  %v2515_v59 = vmul.f32 %v1826_v26, %v449_v54  ;;  %v2518_v56 = vmul.f32 %v1853_v52, %v450_v62  ;;  %v2520_v34 = vmul.f32 %v554_v50, %v554_v50  ;;  %v3876_v15 = vld [vmem:[#allocation94_spill] sm:$0xff] }
  0x89   : > { %3871 = vst [vmem:[#allocation72_spill] sm:$0xff] %v2509_v41  ;;  %v2522_v19 = vmul.f32 %v555_v25, %v555_v25  ;;  %v2524_v32 = vmul.f32 %v556_v31, %v556_v31  ;;  %v2526_v29 = vmul.f32 %v557_v60, %v557_v60  ;;  %v2528_v47 = vmul.f32 %v558_v48, %v558_v48  ;;  %v3877_v31 = vld [vmem:[#allocation5_spill] sm:$0xff]  ;;  %v3878_v60 = vld [vmem:[#allocation20_spill] sm:$0xff]  ;;  %v3879_v48 = vld [vmem:[#allocation90_spill] sm:$0xff] }
  0x8a   : > { %3872 = vst [vmem:[#allocation49_spill] sm:$0xff] %v2515_v59  ;;  %3873 = vst [vmem:[#allocation73_spill] sm:$0xff] %v2518_v56  ;;  %v2530_v39 = vmul.f32 %v559_v9, %v559_v9  ;;  %v2534_v58 = vmul.f32 %v3876_v15, %v3876_v15  ;;  %v2538_v42 = vmul.f32 %v2011_v44, %v2011_v44  ;;  %vm813_vm0 = vcmp.lt.s32.totalorder %v3879_v48, 500  ;;  %v3906_v43 = vld [vmem:[#allocation66_spill] sm:$0xff] }
  0x8b   : > { %3874 = vst [vmem:[#allocation76_spill] sm:$0xff] %v2526_v29  ;;  %3875 = vst [vmem:[#allocation53_spill] sm:$0xff] %v2528_v47  ;;  %v2542_v54 = vmul.f32 %v2017_v16, %v2017_v16  ;;  %v2546_v62 = vmul.f32 %v2023_v45, %v2023_v45  ;;  %v2550_v50 = vmul.f32 %v2029_v1, %v2029_v1  ;;  %v3900_v29 = vld [vmem:[#allocation34_spill] sm:$0xff]  ;;  %vm827_vm5 = vcmp.lt.s32.totalorder %v3906_v43, 500 }
  0x8c   : > { %v2554_v25 = vmul.f32 %v2035_v2, %v2035_v2  ;;  %v2558_v44 = vmul.f32 %v2041_v3, %v2041_v3  ;;  %v2562_v16 = vmul.f32 %v2047_v4, %v2047_v4  ;;  %v2566_v45 = vmul.f32 %v2053_v5, %v2053_v5 }
  0x8d   : > { %v2570_v1 = vmul.f32 %v2059_v6, %v2059_v6  ;;  %v2574_v2 = vmul.f32 %v2065_v7, %v2065_v7  ;;  %v2578_v3 = vmul.f32 %v2071_v8, %v2071_v8  ;;  %v2582_v4 = vmul.f32 %v2077_v10, %v2077_v10 }
  0x8e   : > { %v2586_v5 = vmul.f32 %v2083_v11, %v2083_v11  ;;  %v2590_v6 = vmul.f32 %v2089_v12, %v2089_v12  ;;  %v2594_v7 = vmul.f32 %v2095_v13, %v2095_v13  ;;  %v2598_v8 = vmul.f32 %v2101_v24, %v2101_v24  ;;  %v3880_v13 = vld [vmem:[#allocation6_spill] sm:$0xff]  ;;  %v3881_v24 = vld [vmem:[#allocation21_spill] sm:$0xff] }
  0x8f   : > { %v2602_v10 = vmul.f32 %v2107_v33, %v2107_v33  ;;  %v2606_v11 = vmul.f32 %v3877_v31, %v3877_v31  ;;  %v2610_v12 = vmul.f32 %v3878_v60, %v3878_v60  ;;  %v2615_v9 = vmul.f32 %v3880_v13, %v3880_v13  ;;  %v3882_v33 = vld [vmem:[#allocation7_spill] sm:$0xff]  ;;  %v3883_v31 = vld [vmem:[#allocation25_spill] sm:$0xff]  ;;  %v3884_v60 = vld [vmem:[#allocation8_spill] sm:$0xff] }
  0x90   : > { %v2619_v15 = vmul.f32 %v3881_v24, %v3881_v24  ;;  %v2623_v37 = vmul.f32 %v3882_v33, %v3882_v33  ;;  %v2627_v18 = vmul.f32 %v3883_v31, %v3883_v31  ;;  %v2632_v55 = vmul.f32 %v3884_v60, %v3884_v60  ;;  %v3885_v13 = vld [vmem:[#allocation26_spill] sm:$0xff]  ;;  %v3886_v24 = vld [vmem:[#allocation9_spill] sm:$0xff]  ;;  %v3887_v33 = vld [vmem:[#allocation27_spill] sm:$0xff] }
  0x91   : > { %v2636_v26 = vmul.f32 %v3885_v13, %v3885_v13  ;;  %v2640_v47 = vmul.f32 %v3886_v24, %v3886_v24  ;;  %v2644_v56 = vmul.f32 %v3887_v33, %v3887_v33  ;;  %v3889_v31 = vld [vmem:[#allocation10_spill] sm:$0xff]  ;;  %v3891_v60 = vld [vmem:[#allocation32_spill] sm:$0xff]  ;;  %v3893_v13 = vld [vmem:[#allocation11_spill] sm:$0xff]  ;;  %vm831_vm9 = vcmp.lt.s32.totalorder %v2445_v14, 500 }
  0x92   : > { %v2649_v59 = vmul.f32 %v3889_v31, %v3889_v31  ;;  %v2653_v41 = vmul.f32 %v3891_v60, %v3891_v60  ;;  %v2657_v52 = vmul.f32 %v3893_v13, %v3893_v13  ;;  %v3895_v24 = vld [vmem:[#allocation33_spill] sm:$0xff]  ;;  %v3897_v33 = vld [vmem:[#allocation95_spill] sm:$0xff]  ;;  %v2667_v31 = vmul.f32 %v3898_v51, %v3898_v51 }
  0x93   : > { %3888 = vst [vmem:[#allocation77_spill] sm:$0xff] %v2644_v56  ;;  %v2661_v49 = vmul.f32 %v3895_v24, %v3895_v24  ;;  %vm814_vm3 = vcmp.lt.s32.totalorder %v3897_v33, 500  ;;  %v2671_v60 = vmul.f32 %v3900_v29, %v3900_v29  ;;  %v2675_v13 = vmul.f32 %v3902_v46, %v3902_v46 }
  0x94   : > { %3890 = vst [vmem:[#allocation54_spill] sm:$0xff] %v2649_v59  ;;  %3892 = vst [vmem:[#allocation78_spill] sm:$0xff] %v2653_v41  ;;  %v2679_v24 = vmul.f32 %v3904_v40, %v3904_v40  ;;  %v3917_v41 = vld [vmem:[#allocation17_spill] sm:$0xff]  ;;  %vm832_vm10 = vcmp.lt.s32.totalorder %v2448_v0, 500  ;;  %vm833_vm11 = vcmp.lt.s32.totalorder %v2454_v36, 500  ;;  %vm834_vm12 = vcmp.lt.s32.totalorder %v2457_v38, 500 }
  0x95   : > { %3894 = vst [vmem:[#allocation80_spill] sm:$0xff] %v2657_v52  ;;  %3896 = vst [vmem:[#allocation59_spill] sm:$0xff] %v2661_v49  ;;  %v3907_v49 = vld [vmem:[#allocation42_spill] sm:$0xff]  ;;  %v3908_v52 = vld [vmem:[#allocation15_spill] sm:$0xff]  ;;  %v2702_v59 = vmul.f32 %v3917_v41, %v3917_v41  ;;  %vm835_vm13 = vcmp.lt.s32.totalorder %v2460_v35, 500  ;;  %vm839_vm14 = vcmp.lt.s32.totalorder %v2475_v17, 500 }
  0x96   : > { %3899 = vst [vmem:[#allocation81_spill] sm:$0xff] %v2667_v31  ;;  %3901 = vst [vmem:[#allocation64_spill] sm:$0xff] %v2671_v60  ;;  %vm828_vm6 = vcmp.lt.s32.totalorder %v3907_v49, 500  ;;  %v2685_v51 = vmul.f32 %v3908_v52, %v3908_v52  ;;  %v3910_v31 = vld [vmem:[#allocation39_spill] sm:$0xff]  ;;  %v3912_v60 = vld [vmem:[#allocation16_spill] sm:$0xff]  ;;  %vm840_vm15 = vcmp.lt.s32.totalorder %v2493_v20, 500 }
  0x97   : > { %3903 = vst [vmem:[#allocation83_spill] sm:$0xff] %v2675_v13  ;;  %3905 = vst [vmem:[#allocation65_spill] sm:$0xff] %v2679_v24  ;;  %v2689_v29 = vmul.f32 %v3910_v31, %v3910_v31  ;;  %v2693_v46 = vmul.f32 %v3912_v60, %v3912_v60  ;;  %v3914_v13 = vld [vmem:[#allocation40_spill] sm:$0xff]  ;;  %v3916_v24 = vld [vmem:[#allocation67_spill] sm:$0xff]  ;;  %v2857_v57 = vsel %vm826_vm4, %v2558_v44, 0.0  ;;  %v2873_v63 = vsel %vm827_vm5, %v2570_v1, 0.0 }
  0x98   : > { %3909 = vst [vmem:[#allocation84_spill] sm:$0xff] %v2685_v51  ;;  %v2697_v40 = vmul.f32 %v3914_v13, %v3914_v13  ;;  %vm829_vm7 = vcmp.lt.s32.totalorder %v3916_v24, 500  ;;  %3918 = vst [vmem:[#allocation75_spill] sm:$0xff] %v2702_v59  ;;  %v3919_v52 = vld [vmem:[#allocation44_spill] sm:$0xff]  ;;  %v3921_v31 = vld [vmem:[#allocation18_spill] sm:$0xff]  ;;  %v2888_v23 = vsel %vm828_vm6, %v2582_v4, 0.0 }
  0x99   : > { %3911 = vst [vmem:[#allocation86_spill] sm:$0xff] %v2689_v29  ;;  %3913 = vst [vmem:[#allocation70_spill] sm:$0xff] %v2693_v46  ;;  %v2706_v51 = vmul.f32 %v3919_v52, %v3919_v52  ;;  %v2710_v29 = vmul.f32 %v3921_v31, %v3921_v31  ;;  %v3923_v60 = vld [vmem:[#allocation45_spill] sm:$0xff]  ;;  %v3925_v13 = vld [vmem:[#allocation43_spill] sm:$0xff]  ;;  %v2895_v44 = vsel %vm828_vm6, %v2586_v5, 0.0  ;;  %v2900_v43 = vsel %vm828_vm6, %v2590_v6, 0.0 }
  0x9a   : > { %3915 = vst [vmem:[#allocation87_spill] sm:$0xff] %v2697_v40  ;;  %v2714_v46 = vmul.f32 %v3923_v60, %v3923_v60  ;;  %vm830_vm8 = vcmp.lt.s32.totalorder %v3925_v13, 500  ;;  %v3926_v40 = vld [vmem:[#allocation19_spill] sm:$0xff]  ;;  %v3928_v41 = vld [vmem:[#allocation46_spill] sm:$0xff]  ;;  %v2915_v1 = vsel %vm829_vm7, %v2602_v10, 0.0  ;;  %v2935_v4 = vsel %vm831_vm9, %v2619_v15, 0.0 }
  0x9b   : > { %3920 = vst [vmem:[#allocation89_spill] sm:$0xff] %v2706_v51  ;;  %3922 = vst [vmem:[#allocation58_spill] sm:$0xff] %v2710_v29  ;;  %v2719_v56 = vmul.f32 %v3926_v40, %v3926_v40  ;;  %v2723_v59 = vmul.f32 %v3928_v41, %v3928_v41  ;;  %v3930_v52 = vld [vmem:[#allocation22_spill] sm:$0xff]  ;;  %v3934_v60 = vld [vmem:[#allocation23_spill] sm:$0xff]  ;;  %v2920_v49 = vsel %vm830_vm8, %v2606_v11, 0.0  ;;  %v2940_v5 = vsel %vm831_vm9, %v2623_v37, 0.0 }
  0x9c   : > { %3924 = vst [vmem:[#allocation63_spill] sm:$0xff] %v2714_v46  ;;  %v2727_v51 = vmul.f32 %v3930_v52, %v3930_v52  ;;  %v3932_v31 = vld [vmem:[#allocation50_spill] sm:$0xff]  ;;  %v2737_v40 = vmul.f32 %v3934_v60, %v3934_v60  ;;  %v3944_v60 = vld [vmem:[#allocation55_spill] sm:$0xff]  ;;  %v2945_v6 = vsel %vm831_vm9, %v2627_v18, 0.0  ;;  %v2960_v37 = vsel %vm832_vm10, %v2640_v47, 0.0  ;;  %v3960_v10 = vld [vmem:[#allocation77_spill] sm:$0xff] }
  0x9d   : > { %3927 = vst [vmem:[#allocation82_spill] sm:$0xff] %v2719_v56  ;;  %3929 = vst [vmem:[#allocation85_spill] sm:$0xff] %v2723_v59  ;;  %v2731_v29 = vmul.f32 %v3932_v31, %v3932_v31  ;;  %v3936_v56 = vld [vmem:[#allocation51_spill] sm:$0xff]  ;;  %v3938_v59 = vld [vmem:[#allocation24_spill] sm:$0xff]  ;;  %v2965_v14 = vsel %vm833_vm11, %v3960_v10, 0.0  ;;  %vm3976_vm6 = vcmp.lt.s32.totalorder %v2463_v61, 500 }
  0x9e   : > { %3931 = vst [vmem:[#allocation88_spill] sm:$0xff] %v2727_v51  ;;  %3935 = vst [vmem:[#allocation92_spill] sm:$0xff] %v2737_v40  ;;  %v2741_v41 = vmul.f32 %v3936_v56, %v3936_v56  ;;  %v2745_v52 = vmul.f32 %v3938_v59, %v3938_v59  ;;  %v3940_v51 = vld [vmem:[#allocation52_spill] sm:$0xff]  ;;  %v2758_v40 = vmul.f32 %v3944_v60, %v3944_v60  ;;  %v3946_v56 = vld [vmem:[#allocation30_spill] sm:$0xff]  ;;  %vm3984_vm9 = vcmp.lt.s32.totalorder %v2469_v28, 500 }
  0x9f   : > { %3933 = vst [vmem:[#allocation91_spill] sm:$0xff] %v2731_v29  ;;  %v2749_v31 = vmul.f32 %v3940_v51, %v3940_v51  ;;  %v3942_v29 = vld [vmem:[#allocation29_spill] sm:$0xff]  ;;  %v3948_v59 = vld [vmem:[#allocation56_spill] sm:$0xff]  ;;  %v3949_v51 = vld [vmem:[#allocation31_spill] sm:$0xff] }
  0xa0   : > { %3937 = vst [vmem:[#allocation93_spill] sm:$0xff] %v2741_v41  ;;  %3939 = vst [vmem:[#allocation94_spill] sm:$0xff] %v2745_v52  ;;  %v2754_v46 = vmul.f32 %v3942_v29, %v3942_v29  ;;  %v2762_v41 = vmul.f32 %v3946_v56, %v3946_v56  ;;  %v2766_v52 = vmul.f32 %v3948_v59, %v3948_v59  ;;  %v3951_v29 = vld [vmem:[#allocation57_spill] sm:$0xff]  ;;  %v3953_v60 = vld [vmem:[#allocation35_spill] sm:$0xff] }
  0xa1   : > { %3941 = vst [vmem:[#allocation5_spill] sm:$0xff] %v2749_v31  ;;  %3945 = vst [vmem:[#allocation90_spill] sm:$0xff] %v2758_v40  ;;  %v2771_v31 = vmul.f32 %v3949_v51, %v3949_v51  ;;  %v2779_v40 = vmul.f32 %v3953_v60, %v3953_v60  ;;  %v3954_v56 = vld [vmem:[#allocation60_spill] sm:$0xff]  ;;  %v3962_v18 = vld [vmem:[#allocation54_spill] sm:$0xff] }
  0xa2   : > { %3943 = vst [vmem:[#allocation20_spill] sm:$0xff] %v2754_v46  ;;  %3947 = vst [vmem:[#allocation6_spill] sm:$0xff] %v2762_v41  ;;  %v2775_v46 = vmul.f32 %v3951_v29, %v3951_v29  ;;  %v2783_v41 = vmul.f32 %v3954_v56, %v3954_v56  ;;  %v3955_v59 = vld [vmem:[#allocation36_spill] sm:$0xff]  ;;  %v2803_v56 = vsel %vm813_vm0, %v2520_v34, 0.0  ;;  %v2824_v34 = vsel %vm824_vm1, %v2534_v58, 0.0  ;;  %v3964_v11 = vld [vmem:[#allocation78_spill] sm:$0xff] }
  0xa3   : > { %3950 = vst [vmem:[#allocation21_spill] sm:$0xff] %v2771_v31  ;;  %v2789_v51 = vmul.f32 %v3955_v59, %v3955_v59  ;;  %v3956_v31 = vld [vmem:[#allocation61_spill] sm:$0xff]  ;;  %v2809_v59 = vsel %vm813_vm0, %v2522_v19, 0.0  ;;  %v2831_v19 = vsel %vm824_vm1, %v2538_v42, 0.0  ;;  %v2846_v58 = vsel %vm825_vm2, %v2550_v50, 0.0  ;;  %3961 = vst [vmem:[#allocation26_spill] sm:$0xff] %v2965_v14 }
  0xa4   : > { %3952 = vst [vmem:[#allocation7_spill] sm:$0xff] %v2775_v46  ;;  %v2793_v29 = vmul.f32 %v3956_v31, %v3956_v31  ;;  %v3957_v46 = vld [vmem:[#allocation37_spill] sm:$0xff]  ;;  %v2814_v31 = vsel %vm813_vm0, %v2524_v32, 0.0  ;;  %v2836_v32 = vsel %vm824_vm1, %v2542_v54, 0.0  ;;  %vm841_vm0 = vcmp.lt.s32.totalorder %v2496_v30, 500  ;;  %v3967_v47 = vld [vmem:[#allocation59_spill] sm:$0xff] }
  0xa5   : > { %v2797_v60 = vmul.f32 %v3957_v46, %v3957_v46  ;;  %v2819_v46 = vsel %vm814_vm3, %v2530_v39, 0.0  ;;  %v2841_v39 = vsel %vm825_vm2, %v2546_v62, 0.0  ;;  %v2852_v42 = vsel %vm825_vm2, %v2554_v25, 0.0  ;;  %v3970_v24 = vld [vmem:[#allocation64_spill] sm:$0xff]  ;;  %v3972_v13 = vld [vmem:[#allocation83_spill] sm:$0xff]  ;;  %v3991_v61 = vld [vmem:[#allocation58_spill] sm:$0xff] }
  0xa6   : > { %v2862_v54 = vsel %vm826_vm4, %v2562_v16, 0.0  ;;  %v2867_v62 = vsel %vm826_vm4, %v2566_v45, 0.0  ;;  %vm842_vm1 = vcmp.lt.s32.totalorder %v2499_v22, 500  ;;  %v2878_v50 = vsel %vm827_vm5, %v2574_v2, 0.0 }
  0xa7   : > { %v2883_v25 = vsel %vm827_vm5, %v2578_v3, 0.0  ;;  %vm843_vm2 = vcmp.lt.s32.totalorder %v2502_v27, 500  ;;  %vm844_vm4 = vcmp.lt.s32.totalorder %v2512_v21, 500  ;;  %v2905_v16 = vsel %vm829_vm7, %v2594_v7, 0.0 }
  0xa8   : > { %v2910_v45 = vsel %vm829_vm7, %v2598_v8, 0.0  ;;  %v2925_v2 = vsel %vm830_vm8, %v2610_v12, 0.0  ;;  %v2930_v3 = vsel %vm830_vm8, %v2615_v9, 0.0  ;;  %vm1006_vm5 = vcmask 556032   ;;  %v3965_v12 = vld [vmem:[#allocation80_spill] sm:$0xff]  ;;  %v3969_v9 = vld [vmem:[#allocation81_spill] sm:$0xff]  ;;  %vm3979_vm7 = vmmov %vm3976_vm6 }
  0xa9   : > { %v2950_v7 = vsel %vm832_vm10, %v2632_v55, 0.0  ;;  %v2955_v8 = vsel %vm832_vm10, %v2636_v26, 0.0  ;;  %v2970_v55 = vsel %vm833_vm11, %v3962_v18, 0.0  ;;  %v2975_v26 = vsel %vm833_vm11, %v3964_v11, 0.0  ;;  %v3974_v18 = vld [vmem:[#allocation65_spill] sm:$0xff]  ;;  %vm3982_vm8 = vmmov %vm3976_vm6  ;;  %v4014_v20 = vld [vmem:[#allocation6_spill] sm:$0xff] }
  0xaa   : > { %3958 = vst [vmem:[#allocation25_spill] sm:$0xff] %v2950_v7  ;;  %3959 = vst [vmem:[#allocation8_spill] sm:$0xff] %v2955_v8  ;;  %v2980_v0 = vsel %vm834_vm12, %v3965_v12, 0.0  ;;  %v2985_v48 = vsel %vm834_vm12, %v3967_v47, 0.0  ;;  %v2990_v15 = vsel %vm834_vm12, %v3969_v9, 0.0  ;;  %v2995_v36 = vsel %vm835_vm13, %v3970_v24, 0.0 }
  0xab   : > { %3963 = vst [vmem:[#allocation9_spill] sm:$0xff] %v2970_v55  ;;  %3966 = vst [vmem:[#allocation27_spill] sm:$0xff] %v2980_v0  ;;  %v3000_v10 = vsel %vm835_vm13, %v3972_v13, 0.0  ;;  %v3005_v11 = vsel %vm835_vm13, %v3974_v18, 0.0  ;;  %v3975_v12 = vld [vmem:[#allocation84_spill] sm:$0xff]  ;;  %v3978_v47 = vld [vmem:[#allocation86_spill] sm:$0xff]  ;;  %v1005_v27 = vadd.f32 %v2809_v59, %v2803_v56 }
  0xac   : > { %3968 = vst [vmem:[#allocation10_spill] sm:$0xff] %v2985_v48  ;;  %3971 = vst [vmem:[#allocation32_spill] sm:$0xff] %v2995_v36  ;;  %v3010_v38 = vsel %vm3976_vm6, %v3975_v12, 0.0  ;;  %v3015_v9 = vsel %vm3979_vm7, %v3978_v47, 0.0  ;;  %v3981_v24 = vld [vmem:[#allocation70_spill] sm:$0xff]  ;;  %v3986_v18 = vld [vmem:[#allocation75_spill] sm:$0xff] }
  0xad   : > { %3973 = vst [vmem:[#allocation11_spill] sm:$0xff] %v3000_v10  ;;  %3977 = vst [vmem:[#allocation33_spill] sm:$0xff] %v3010_v38  ;;  %v3020_v13 = vsel %vm3982_vm8, %v3981_v24, 0.0  ;;  %v3983_v10 = vld [vmem:[#allocation87_spill] sm:$0xff]  ;;  %v3989_v38 = vld [vmem:[#allocation89_spill] sm:$0xff]  ;;  %vm3992_vm12 = vcmp.lt.s32.totalorder %v2472_v53, 500 }
  0xae   : > { %3980 = vst [vmem:[#allocation95_spill] sm:$0xff] %v3015_v9  ;;  %v3025_v35 = vsel %vm3984_vm9, %v3983_v10, 0.0  ;;  %vm3987_vm10 = vmmov %vm3984_vm9  ;;  %v3040_v24 = vsel %vm3992_vm12, %v3991_v61, 0.0  ;;  %v3994_v9 = vld [vmem:[#allocation63_spill] sm:$0xff]  ;;  %v356_v36 = vld [vmem:[%s1458_s4 + $0x50] sm:$0xff]  ;;  %v3132_v22 = vsel %vm844_vm4, %v2789_v51, 0.0 }
  0xaf   : > { %3985 = vst [vmem:[#allocation12_spill] sm:$0xff] %v3025_v35  ;;  %v3030_v12 = vsel %vm3987_vm10, %v3986_v18, 0.0  ;;  %vm3990_vm11 = vmmov %vm3984_vm9  ;;  %v3997_v35 = vld [vmem:[#allocation82_spill] sm:$0xff]  ;;  %v4032_v56 = vld [vmem:[#allocation79_spill] sm:$0xff]  ;;  %v3183_v33 = vsel %vm1006_vm5, %v2867_v62, 0.0  ;;  %v3205_v62 = vsel %vm1006_vm5, %v2945_v6, 0.0 }
  0xb0   : > { %3988 = vst [vmem:[#allocation34_spill] sm:$0xff] %v3030_v12  ;;  %v3035_v47 = vsel %vm3990_vm11, %v3989_v38, 0.0  ;;  %3993 = vst [vmem:[#allocation14_spill] sm:$0xff] %v3040_v24  ;;  %v3999_v12 = vld [vmem:[#allocation85_spill] sm:$0xff]  ;;  %v4001_v38 = vld [vmem:[#allocation88_spill] sm:$0xff] }
  0xb1   : > { %vm3995_vm13 = vmmov %vm3992_vm12  ;;  %v3055_v28 = vsel %vm839_vm14, %v3999_v12, 0.0  ;;  %v3060_v61 = vsel %vm839_vm14, %v4001_v38, 0.0  ;;  %v4003_v24 = vld [vmem:[#allocation91_spill] sm:$0xff]  ;;  %v4013_v48 = vld [vmem:[#allocation90_spill] sm:$0xff]  ;;  %4021 = vst [vmem:[#allocation45_spill] sm:$0xff] %v3132_v22 }
  0xb2   : > { %v3045_v10 = vsel %vm3995_vm13, %v3994_v9, 0.0  ;;  %vm3998_vm6 = vmmov %vm3992_vm12  ;;  %4000 = vst [vmem:[#allocation66_spill] sm:$0xff] %v3055_v28  ;;  %v3065_v9 = vsel %vm839_vm14, %v4003_v24, 0.0  ;;  %v4008_v28 = vld [vmem:[#allocation94_spill] sm:$0xff]  ;;  %v4011_v24 = vld [vmem:[#allocation20_spill] sm:$0xff] }
  0xb3   : > { %3996 = vst [vmem:[#allocation38_spill] sm:$0xff] %v3045_v10  ;;  %v3050_v18 = vsel %vm3998_vm6, %v3997_v35, 0.0  ;;  %4002 = vst [vmem:[#allocation42_spill] sm:$0xff] %v3060_v61  ;;  %v4004_v10 = vld [vmem:[#allocation92_spill] sm:$0xff]  ;;  %v4006_v35 = vld [vmem:[#allocation93_spill] sm:$0xff]  ;;  %v3080_v38 = vsel %vm840_vm15, %v4008_v28, 0.0 }
  0xb4   : > { %v3070_v53 = vsel %vm840_vm15, %v4004_v10, 0.0  ;;  %v3075_v12 = vsel %vm840_vm15, %v4006_v35, 0.0  ;;  %v4009_v61 = vld [vmem:[#allocation5_spill] sm:$0xff]  ;;  %v3090_v10 = vsel %vm841_vm0, %v4011_v24, 0.0  ;;  %v3097_v35 = vsel %vm841_vm0, %v4013_v48, 0.0  ;;  %v4040_v6 = vld [vmem:[#allocation74_spill] sm:$0xff] }
  0xb5   : > { %4005 = vst [vmem:[#allocation15_spill] sm:$0xff] %v3070_v53  ;;  %4007 = vst [vmem:[#allocation39_spill] sm:$0xff] %v3075_v12  ;;  %v3085_v17 = vsel %vm841_vm0, %v4009_v61, 0.0  ;;  %v260_v53 = vld [vmem:[%s1426_s28 + $0x50] sm:$0xff]  ;;  %v3102_v28 = vsel %vm842_vm1, %v4014_v20, 0.0  ;;  %v3107_v61 = vsel %vm842_vm1, %v2766_v52, 0.0 }
  0xb6   : > { %4010 = vst [vmem:[#allocation16_spill] sm:$0xff] %v3085_v17  ;;  %4012 = vst [vmem:[#allocation40_spill] sm:$0xff] %v3090_v10  ;;  %v4017_v17 = vld [vmem:[#allocation21_spill] sm:$0xff]  ;;  %v4018_v10 = vld [vmem:[#allocation7_spill] sm:$0xff]  ;;  %v3122_v48 = vsel %vm843_vm2, %v2779_v40, 0.0  ;;  %v3127_v52 = vsel %vm843_vm2, %v2783_v41, 0.0  ;;  %v452_v51 = vsub.f32 %v260_v53, %v356_v36 }
  0xb7   : > { %4015 = vst [vmem:[#allocation67_spill] sm:$0xff] %v3102_v28  ;;  %4016 = vst [vmem:[#allocation17_spill] sm:$0xff] %v3107_v61  ;;  %v3112_v24 = vsel %vm842_vm1, %v4017_v17, 0.0  ;;  %v3117_v30 = vsel %vm843_vm2, %v4018_v10, 0.0  ;;  %v3137_v17 = vsel %vm844_vm4, %v2793_v29, 0.0  ;;  %v3142_v40 = vsel %vm844_vm4, %v2797_v60, 0.0 }
  0xb8   : > { %4019 = vst [vmem:[#allocation44_spill] sm:$0xff] %v3117_v30  ;;  %4020 = vst [vmem:[#allocation18_spill] sm:$0xff] %v3122_v48  ;;  %v1007_v41 = vsel %vm1006_vm5, %v2814_v31, 0.0  ;;  %v4023_v10 = vld [vmem:[#allocation68_spill] sm:$0xff]  ;;  %v4024_v20 = vld [vmem:[#allocation71_spill] sm:$0xff]  ;;  %v564_v14 = vmul.f32 %v4040_v6, %v452_v51 }
  0xb9   : > { %4022 = vst [vmem:[#allocation43_spill] sm:$0xff] %v3137_v17  ;;  %v4025_v22 = vsub.f32 %v4023_v10, %v4024_v20  ;;  %v4026_v48 = vld [vmem:[#allocation69_spill] sm:$0xff]  ;;  %v4027_v17 = vld [vmem:[#allocation62_spill] sm:$0xff]  ;;  %v4028_v30 = vld [vmem:[#allocation76_spill] sm:$0xff] }
  0xba   : > { %vm815_vm14 = vcmp.lt.s32.totalorder %v4027_v17, 500  ;;  %v912_v21 = vsel %vm814_vm3, %v4028_v30, 0.0  ;;  %v4029_v60 = vld [vmem:[#allocation47_spill] sm:$0xff]  ;;  %v4030_v61 = vld [vmem:[#allocation48_spill] sm:$0xff]  ;;  %v4034_v53 = vld [vmem:[#allocation49_spill] sm:$0xff] }
  0xbb   : > { %v563_v29 = vmul.f32 %v4026_v48, %v4025_v22  ;;  %v4031_v28 = vsub.f32 %v4029_v60, %v4030_v61  ;;  %v4033_v31 = vld [vmem:[#allocation72_spill] sm:$0xff]  ;;  %v657_v10 = vmul.f32 %v4034_v53, %v4034_v53  ;;  %v1008_v22 = vadd.f32 %v1007_v41, %v1005_v27  ;;  %v4035_v20 = vld [vmem:[#allocation73_spill] sm:$0xff]  ;;  %v262_v60 = vld [vmem:[%s1426_s28 + $0x60] sm:$0xff] }
  0xbc   : > { %v656_v36 = vmul.f32 %v4033_v31, %v4033_v31  ;;  %v658_v12 = vmul.f32 %v4035_v20, %v4035_v20  ;;  %v4036_v0 = vld [vmem:[#allocation53_spill] sm:$0xff]  ;;  %v1011_v61 = vsel %vm1006_vm5, %v2819_v46, 0.0  ;;  %v358_v31 = vld [vmem:[%s1458_s4 + $0x60] sm:$0xff]  ;;  %v3179_v27 = vsel %vm1006_vm5, %v2852_v42, 0.0 }
  0xbd   : > { %v565_v59 = vmul.f32 %v4032_v56, %v4031_v28  ;;  %v913_v30 = vsel %vm814_vm3, %v4036_v0, 0.0  ;;  %v3173_v28 = vsel %vm1006_vm5, %v2836_v32, 0.0  ;;  %v1009_v53 = vadd.f32 %v1008_v22, %v912_v21  ;;  %v264_v46 = vld [vmem:[%s1426_s28 + $0x70] sm:$0xff]  ;;  %v359_v22 = vld [vmem:[%s1458_s4 + $0x68] sm:$0xff]  ;;  %v266_v17 = vld [vmem:[%s1426_s28 + $0x80] sm:$0xff] }
  0xbe   : > { %v3187_v0 = vsel %vm1006_vm5, %v2883_v25, 0.0  ;;  %v360_v41 = vld [vmem:[%s1458_s4 + $0x70] sm:$0xff]  ;;  %v3193_v32 = vsel %vm1006_vm5, %v2900_v43, 0.0  ;;  %v3197_v21 = vsel %vm1006_vm5, %v2915_v1, 0.0  ;;  %v3201_v42 = vsel %vm1006_vm5, %v2930_v3, 0.0  ;;  %v263_v25 = vld [vmem:[%s1426_s28 + $0x68] sm:$0xff] }
  0xbf   : > { %v1010_v20 = vadd.f32 %v1009_v53, %v913_v30  ;;  %v3211_v43 = vsel %vm1006_vm5, %v2960_v37, 0.0  ;;  %v3215_v1 = vsel %vm1006_vm5, %v2975_v26, 0.0  ;;  %v3219_v3 = vsel %vm1006_vm5, %v2990_v15, 0.0  ;;  %v4043_v7 = vld [vmem:[#allocation41_spill] sm:$0xff] }
  0xc0   : > { %4037 = vst [vmem:[#allocation19_spill] sm:$0xff] %v3211_v43  ;;  %4038 = vst [vmem:[#allocation46_spill] sm:$0xff] %v3215_v1  ;;  %v454_v55 = vsub.f32 %v262_v60, %v358_v31  ;;  %v915_v30 = vsel %vm815_vm14, %v656_v36, 0.0  ;;  %v3226_v37 = vsel %vm1006_vm5, %v3005_v11, 0.0  ;;  %v456_v53 = vsub.f32 %v264_v46, %v360_v41  ;;  %v4042_v43 = vld [vmem:[#allocation13_spill] sm:$0xff]  ;;  %v265_v36 = vld [vmem:[%s1426_s28 + $0x78] sm:$0xff] }
  0xc1   : > { %4039 = vst [vmem:[#allocation22_spill] sm:$0xff] %v3219_v3  ;;  %4041 = vst [vmem:[#allocation50_spill] sm:$0xff] %v3226_v37  ;;  %v751_v26 = vadd.s32 32, %v4042_v43  ;;  %v917_v1 = vsel %vm815_vm14, %v658_v12, 0.0  ;;  %v1012_v15 = vadd.f32 %v1011_v61, %v1010_v20  ;;  %v455_v60 = vsub.f32 %v263_v25, %v359_v22  ;;  %v361_v3 = vld [vmem:[%s1458_s4 + $0x78] sm:$0xff]  ;;  %v267_v41 = vld [vmem:[%s1426_s28 + $0x88] sm:$0xff] }
  0xc2   : > { %v659_v51 = vmul.f32 %v563_v29, %v563_v29  ;;  %v916_v31 = vsel %vm815_vm14, %v657_v10, 0.0  ;;  %v661_v8 = vmul.f32 %v565_v59, %v565_v59  ;;  %vm816_vm3 = vcmp.lt.s32.totalorder %v4043_v7, 500  ;;  %v363_v12 = vld [vmem:[%s1458_s4 + $0x88] sm:$0xff]  ;;  %v362_v10 = vld [vmem:[%s1458_s4 + $0x80] sm:$0xff]  ;;  %v365_v7 = vld [vmem:[%s1458_s4 + $0x98] sm:$0xff] }
  0xc3   : > { %v1013_v11 = vadd.f32 %v1012_v15, %v915_v30  ;;  %v3238_v46 = vsel %vm1006_vm5, %v3020_v13, 0.0  ;;  %v566_v61 = vmul.f32 %v4026_v48, %v454_v55  ;;  %v660_v20 = vmul.f32 %v564_v14, %v564_v14  ;;  %v4045_v25 = vld [vmem:[#allocation28_spill] sm:$0xff] }
  0xc4   : > { %4044 = vst [vmem:[#allocation23_spill] sm:$0xff] %v3238_v46  ;;  %v1015_v29 = vsel %vm1006_vm5, %v917_v1, 0.0  ;;  %v568_v59 = vmul.f32 %v4032_v56, %v456_v53  ;;  %v785_v22 = vadd.s32 %v4045_v25, %v751_v26  ;;  %v457_v15 = vsub.f32 %v265_v36, %v361_v3 }
  0xc5   : > { %v1014_v30 = vadd.f32 %v1013_v11, %v916_v31  ;;  %v567_v13 = vmul.f32 %v4040_v6, %v455_v60  ;;  %v918_v55 = vsel %vm816_vm3, %v659_v51, 0.0  ;;  %v459_v14 = vsub.f32 %v267_v41, %v363_v12  ;;  %v268_v31 = vld [vmem:[%s1426_s28 + $0x90] sm:$0xff]  ;;  %v270_v41 = vld [vmem:[%s1426_s28 + $0xa0] sm:$0xff] }
  0xc6   : > { %v752_v1 = vadd.s32 40, %v4042_v43  ;;  %v920_v46 = vsel %vm816_vm3, %v661_v8, 0.0  ;;  %v458_v53 = vsub.f32 %v266_v17, %v362_v10  ;;  %v662_v26 = vmul.f32 %v566_v61, %v566_v61  ;;  %v364_v60 = vld [vmem:[%s1458_s4 + $0x90] sm:$0xff]  ;;  %v366_v12 = vld [vmem:[%s1458_s4 + $0xa0] sm:$0xff]  ;;  %v269_v61 = vld [vmem:[%s1426_s28 + $0x98] sm:$0xff] }
  0xc7   : > { %v1016_v37 = vadd.f32 %v1015_v29, %v1014_v30  ;;  %v919_v3 = vsel %vm816_vm3, %v660_v20, 0.0  ;;  %v664_v36 = vmul.f32 %v568_v59, %v568_v59  ;;  %vm817_vm15 = vcmp.lt.s32.totalorder %v785_v22, 500  ;;  %v368_v22 = vld [vmem:[%s1458_s4 + $0xb0] sm:$0xff] }
  0xc8   : > { %v3260_v51 = vsel %vm1006_vm5, %v3035_v47, 0.0  ;;  %v569_v8 = vmul.f32 %v4026_v48, %v457_v15  ;;  %v663_v29 = vmul.f32 %v567_v13, %v567_v13  ;;  %v1019_v17 = vsel %vm1006_vm5, %v920_v46, 0.0 }
  0xc9   : > { %v1017_v11 = vadd.f32 %v1016_v37, %v918_v55  ;;  %4046 = vst [vmem:[#allocation51_spill] sm:$0xff] %v3260_v51  ;;  %v571_v20 = vmul.f32 %v4032_v56, %v459_v14  ;;  %v786_v10 = vadd.s32 %v4045_v25, %v752_v1  ;;  %v460_v59 = vsub.f32 %v268_v31, %v364_v60  ;;  %v367_v31 = vld [vmem:[%s1458_s4 + $0xa8] sm:$0xff] }
  0xca   : > { %v570_v47 = vmul.f32 %v4040_v6, %v458_v53  ;;  %v921_v30 = vsel %vm817_vm15, %v662_v26, 0.0  ;;  %v462_v15 = vsub.f32 %v270_v41, %v366_v12  ;;  %v753_v13 = vadd.s32 48, %v4042_v43  ;;  %v369_v41 = vld [vmem:[%s1458_s4 + $0xb8] sm:$0xff] }
  0xcb   : > { %v1018_v37 = vadd.f32 %v1017_v11, %v919_v3  ;;  %v923_v46 = vsel %vm817_vm15, %v664_v36, 0.0  ;;  %v461_v51 = vsub.f32 %v269_v61, %v365_v7  ;;  %v665_v14 = vmul.f32 %v569_v8, %v569_v8  ;;  %v271_v3 = vld [vmem:[%s1426_s28 + $0xa8] sm:$0xff]  ;;  %v273_v11 = vld [vmem:[%s1426_s28 + $0xb8] sm:$0xff]  ;;  %v272_v8 = vld [vmem:[%s1426_s28 + $0xb0] sm:$0xff] }
  0xcc   : > { %v922_v1 = vsel %vm817_vm15, %v663_v29, 0.0  ;;  %v667_v60 = vmul.f32 %v571_v20, %v571_v20  ;;  %vm818_vm0 = vcmp.lt.s32.totalorder %v786_v10, 500  ;;  %v3279_v26 = vsel %vm1006_vm5, %v3050_v18, 0.0  ;;  %v371_v10 = vld [vmem:[%s1458_s4 + $0xc8] sm:$0xff] }
  0xcd   : > { %v1020_v55 = vadd.f32 %v1019_v17, %v1018_v37  ;;  %v572_v36 = vmul.f32 %v4026_v48, %v460_v59  ;;  %v666_v12 = vmul.f32 %v570_v47, %v570_v47  ;;  %v1023_v17 = vsel %vm1006_vm5, %v923_v46, 0.0 }
  0xce   : > { %v574_v29 = vmul.f32 %v4032_v56, %v462_v15  ;;  %v787_v61 = vadd.s32 %v4045_v25, %v753_v13  ;;  %v463_v20 = vsub.f32 %v271_v3, %v367_v31  ;;  %v573_v18 = vmul.f32 %v4040_v6, %v461_v51  ;;  %v370_v3 = vld [vmem:[%s1458_s4 + $0xc0] sm:$0xff] }
  0xcf   : > { %v1021_v53 = vadd.f32 %v1020_v55, %v921_v30  ;;  %v924_v37 = vsel %vm818_vm0, %v665_v14, 0.0  ;;  %v465_v59 = vsub.f32 %v273_v11, %v369_v41  ;;  %v754_v47 = vadd.s32 56, %v4042_v43  ;;  %v372_v11 = vld [vmem:[%s1458_s4 + $0xd0] sm:$0xff] }
  0xd0   : > { %v926_v30 = vsel %vm818_vm0, %v667_v60, 0.0  ;;  %v464_v55 = vsub.f32 %v272_v8, %v368_v22  ;;  %v668_v15 = vmul.f32 %v572_v36, %v572_v36  ;;  %v925_v13 = vsel %vm818_vm0, %v666_v12, 0.0  ;;  %v275_v36 = vld [vmem:[%s1426_s28 + $0xc8] sm:$0xff] }
  0xd1   : > { %v1022_v7 = vadd.f32 %v1021_v53, %v922_v1  ;;  %v274_v1 = vld [vmem:[%s1426_s28 + $0xc0] sm:$0xff]  ;;  %v670_v31 = vmul.f32 %v574_v29, %v574_v29  ;;  %vm819_vm1 = vcmp.lt.s32.totalorder %v787_v61, 500  ;;  %v3298_v14 = vsel %vm1006_vm5, %v3065_v9, 0.0  ;;  %v276_v53 = vld [vmem:[%s1426_s28 + $0xd0] sm:$0xff] }
  0xd2   : > { %4047 = vst [vmem:[#allocation24_spill] sm:$0xff] %v3298_v14  ;;  %v575_v60 = vmul.f32 %v4026_v48, %v463_v20  ;;  %v669_v41 = vmul.f32 %v573_v18, %v573_v18  ;;  %v577_v12 = vmul.f32 %v4032_v56, %v465_v59  ;;  %v788_v8 = vadd.s32 %v4045_v25, %v754_v47  ;;  %v374_v61 = vld [vmem:[%s1458_s4 + $0xe0] sm:$0xff] }
  0xd3   : > { %v1024_v46 = vadd.f32 %v1023_v17, %v1022_v7  ;;  %v1027_v17 = vsel %vm1006_vm5, %v926_v30, 0.0  ;;  %v466_v29 = vsub.f32 %v274_v1, %v370_v3  ;;  %v576_v9 = vmul.f32 %v4040_v6, %v464_v55  ;;  %v373_v1 = vld [vmem:[%s1458_s4 + $0xd8] sm:$0xff] }
  0xd4   : > { %v927_v7 = vsel %vm819_vm1, %v668_v15, 0.0  ;;  %v468_v20 = vsub.f32 %v276_v53, %v372_v11  ;;  %v755_v18 = vadd.s32 64, %v4042_v43  ;;  %v671_v59 = vmul.f32 %v575_v60, %v575_v60  ;;  %v375_v53 = vld [vmem:[%s1458_s4 + $0xe8] sm:$0xff]  ;;  %v278_v60 = vld [vmem:[%s1426_s28 + $0xe0] sm:$0xff] }
  0xd5   : > { %v1025_v51 = vadd.f32 %v1024_v46, %v924_v37  ;;  %v929_v37 = vsel %vm819_vm1, %v670_v31, 0.0  ;;  %v467_v46 = vsub.f32 %v275_v36, %v371_v10  ;;  %v928_v47 = vsel %vm819_vm1, %v669_v41, 0.0 }
  0xd6   : > { %v673_v3 = vmul.f32 %v577_v12, %v577_v12  ;;  %vm820_vm2 = vcmp.lt.s32.totalorder %v788_v8, 500  ;;  %v3317_v15 = vsel %vm1006_vm5, %v3080_v38, 0.0  ;;  %v578_v31 = vmul.f32 %v4026_v48, %v466_v29 }
  0xd7   : > { %v1026_v22 = vadd.f32 %v1025_v51, %v925_v13  ;;  %v277_v13 = vld [vmem:[%s1426_s28 + $0xd8] sm:$0xff]  ;;  %4048 = vst [vmem:[#allocation52_spill] sm:$0xff] %v3317_v15  ;;  %v279_v51 = vld [vmem:[%s1426_s28 + $0xe8] sm:$0xff]  ;;  %v672_v11 = vmul.f32 %v576_v9, %v576_v9  ;;  %v580_v41 = vmul.f32 %v4032_v56, %v468_v20  ;;  %v789_v36 = vadd.s32 %v4045_v25, %v755_v18 }
  0xd8   : > { %v469_v12 = vsub.f32 %v277_v13, %v373_v1  ;;  %v579_v38 = vmul.f32 %v4040_v6, %v467_v46  ;;  %v471_v29 = vsub.f32 %v279_v51, %v375_v53  ;;  %v756_v9 = vadd.s32 72, %v4042_v43  ;;  %v376_v13 = vld [vmem:[%s1458_s4 + $0xf0] sm:$0xff]  ;;  %v378_v51 = vld [vmem:[%s1458_s4 + $0x100] sm:$0xff] }
  0xd9   : > { %v1028_v30 = vadd.f32 %v1027_v17, %v1026_v22  ;;  %v1031_v17 = vsel %vm1006_vm5, %v929_v37, 0.0  ;;  %v930_v22 = vsel %vm820_vm2, %v671_v59, 0.0  ;;  %v674_v20 = vmul.f32 %v578_v31, %v578_v31  ;;  %v377_v31 = vld [vmem:[%s1458_s4 + $0xf8] sm:$0xff] }
  0xda   : > { %v931_v18 = vsel %vm820_vm2, %v672_v11, 0.0  ;;  %v676_v1 = vmul.f32 %v580_v41, %v580_v41  ;;  %vm821_vm4 = vcmp.lt.s32.totalorder %v789_v36, 500  ;;  %v3336_v59 = vsel %vm1006_vm5, %v3097_v35, 0.0 }
  0xdb   : > { %v1029_v55 = vadd.f32 %v1028_v30, %v927_v7  ;;  %v932_v7 = vsel %vm820_vm2, %v673_v3, 0.0  ;;  %v470_v30 = vsub.f32 %v278_v60, %v374_v61  ;;  %4049 = vst [vmem:[#allocation29_spill] sm:$0xff] %v3336_v59  ;;  %v581_v3 = vmul.f32 %v4026_v48, %v469_v12  ;;  %v281_v60 = vld [vmem:[%s1426_s28 + $0xf8] sm:$0xff] }
  0xdc   : > { %v675_v53 = vmul.f32 %v579_v38, %v579_v38  ;;  %v583_v8 = vmul.f32 %v4032_v56, %v471_v29  ;;  %v790_v11 = vadd.s32 %v4045_v25, %v756_v9  ;;  %v933_v35 = vsel %vm821_vm4, %v674_v20, 0.0 }
  0xdd   : > { %v1030_v10 = vadd.f32 %v1029_v55, %v928_v47  ;;  %v280_v47 = vld [vmem:[%s1426_s28 + $0xf0] sm:$0xff]  ;;  %v282_v55 = vld [vmem:[%s1426_s28 + $0x100] sm:$0xff]  ;;  %v935_v12 = vsel %vm821_vm4, %v676_v1, 0.0  ;;  %v473_v59 = vsub.f32 %v281_v60, %v377_v31  ;;  %v3353_v9 = vsel %vm1006_vm5, %v3112_v24, 0.0  ;;  %s1295_s28 = sshll.u32 %s1353_s16, 4  ;;  %s1296_s28 = int_to_ptr.vmem [resolvable:$false] %s1295_s28 }
  0xde   : > { %v472_v41 = vsub.f32 %v280_v47, %v376_v13  ;;  %v934_v15 = vsel %vm821_vm4, %v675_v53, 0.0  ;;  %v679_v14 = vmul.f32 %v583_v8, %v583_v8  ;;  %vm822_vm7 = vcmp.lt.s32.totalorder %v790_v11, 500  ;;  %s1297_s29 = scalar_lea.vmem %s1296_s28, 256  ;;  %p1298_p0 = scmp.lt.s32.totalorder %s1165_s17, %s1296_s28 }
  0xdf   : > { %v1032_v37 = vadd.f32 %v1031_v17, %v1030_v10  ;;  %v1035_v17 = vsel %vm1006_vm5, %v932_v7, 0.0  ;;  %v582_v10 = vmul.f32 %v4040_v6, %v470_v30  ;;  %v677_v7 = vmul.f32 %v581_v3, %v581_v3  ;;  %p1299_p1 = scmp.lt.s32.totalorder %s1297_s29, %s1291_s27 }
  0xe0   : > { %v584_v30 = vmul.f32 %v4026_v48, %v472_v41  ;;  %v585_v36 = vmul.f32 %v4040_v6, %v473_v59  ;;  %v3362_v48 = vsel %vm1006_vm5, %v3127_v52, 0.0 }
  0xe1   : > { %v1033_v46 = vadd.f32 %v1032_v37, %v930_v22  ;;  %v474_v22 = vsub.f32 %v282_v55, %v378_v51  ;;  %v757_v37 = vadd.s32 80, %v4042_v43  ;;  %v678_v20 = vmul.f32 %v582_v10, %v582_v10  ;;  %p1300_p2 = por %p1299_p1, %p1298_p0 }
  0xe2   : > { %v938_v55 = vsel %vm822_vm7, %v679_v14, 0.0  ;;  %v680_v3 = vmul.f32 %v584_v30, %v584_v30  ;;  %v681_v60 = vmul.f32 %v585_v36, %v585_v36  ;;  %v3367_v14 = vsel %vm1006_vm5, %v3142_v40, 0.0  ;;  %v4050_v30 = vld [vmem:[#allocation25_spill] sm:$0xff]  ;;  %v4056_v36 = vld [vmem:[#allocation27_spill] sm:$0xff] }
  0xe3   : > { %v1034_v61 = vadd.f32 %v1033_v46, %v931_v18  ;;  %v1039_v18 = vsel %vm1006_vm5, %v935_v12, 0.0  ;;  %v586_v47 = vmul.f32 %v4032_v56, %v474_v22  ;;  %v791_v13 = vadd.s32 %v4045_v25, %v757_v37  ;;  %p1301_p3 = pnand %p1300_p2, %p1294_p13 }
  0xe4   : > { %v936_v46 = vsel %vm822_vm7, %v677_v7, 0.0  ;;  %v937_v53 = vsel %vm822_vm7, %v678_v20, 0.0  ;;  %v1043_v56 = vsel %vm1006_vm5, %v938_v55, 0.0  ;;  %v4051_v20 = vld [vmem:[#allocation8_spill] sm:$0xff]  ;;  %v4058_v55 = vld [vmem:[#allocation22_spill] sm:$0xff] }
  0xe5   : > { %v1036_v38 = vadd.f32 %v1035_v17, %v1034_v61  ;;  %v682_v17 = vmul.f32 %v586_v47, %v586_v47  ;;  %vm823_vm8 = vcmp.lt.s32.totalorder %v791_v13, 500  ;;  %v4053_v47 = vld [vmem:[#allocation26_spill] sm:$0xff]  ;;  %v4054_v13 = vld [vmem:[#allocation9_spill] sm:$0xff] }
  0xe6   : > { %v939_v25 = vsel %vm823_vm8, %v680_v3, 0.0  ;;  %v940_v6 = vsel %vm823_vm8, %v681_v60, 0.0  ;;  %v4060_v3 = vld [vmem:[#allocation11_spill] sm:$0xff]  ;;  %v4062_v60 = vld [vmem:[#allocation33_spill] sm:$0xff] }
  0xe7   : > { %v1037_v29 = vadd.f32 %v1036_v38, %v933_v35 }
  0xe9   : > { %v1038_v1 = vadd.f32 %v1037_v29, %v934_v15  ;;  %v941_v15 = vsel %vm823_vm8, %v682_v17, 0.0  ;;  %v4061_v17 = vld [vmem:[#allocation50_spill] sm:$0xff] }
  0xea   : > { %v1047_v11 = vsel %vm1006_vm5, %v941_v15, 0.0  ;;  %v4064_v15 = vld [vmem:[#allocation23_spill] sm:$0xff]  ;;  %vm1144_vm5 = vcmp.eq.s32.totalorder %v4042_v43, 0 }
  0xeb   : > { %v1040_v51 = vadd.f32 %v1039_v18, %v1038_v1  ;;  %v4052_v18 = vld [vmem:[#allocation19_spill] sm:$0xff]  ;;  %v4055_v1 = vld [vmem:[#allocation46_spill] sm:$0xff] }
  0xed   : > { %v1041_v24 = vadd.f32 %v1040_v51, %v936_v46  ;;  %v4057_v46 = vld [vmem:[#allocation10_spill] sm:$0xff]  ;;  %v4059_v51 = vld [vmem:[#allocation32_spill] sm:$0xff] }
  0xef   : > { %v1042_v31 = vadd.f32 %v1041_v24, %v937_v53 }
  0xf1   : > { %v1044_v8 = vadd.f32 %v1043_v56, %v1042_v31  ;;  %v4063_v31 = vld [vmem:[#allocation95_spill] sm:$0xff] }
  0xf3   : > { %v1045_v59 = vadd.f32 %v1044_v8, %v939_v25 }
  0xf5   : > { %v1046_v61 = vadd.f32 %v1045_v59, %v940_v6  ;;  %v4065_v6 = vld [vmem:[#allocation12_spill] sm:$0xff] }
  0xf7   : > { %v1048_v41 = vadd.f32 %v1047_v11, %v1046_v61  ;;  %v4066_v11 = vld [vmem:[#allocation34_spill] sm:$0xff] }
  0xf9   : > { %v1049_v52 = vadd.f32 %v1048_v41, %v2824_v34  ;;  %v4067_v41 = vld [vmem:[#allocation51_spill] sm:$0xff] }
  0xfb   : > { %v1050_v10 = vadd.f32 %v1049_v52, %v2831_v19 }
  0xfd   : > { %v1052_v35 = vadd.f32 %v3173_v28, %v1050_v10  ;;  %v4068_v10 = vld [vmem:[#allocation14_spill] sm:$0xff] }
  0xff   : > { %v1053_v22 = vadd.f32 %v1052_v35, %v2841_v39 }
 0x101   : > { %v1054_v37 = vadd.f32 %v1053_v22, %v2846_v58  ;;  %v4069_v22 = vld [vmem:[#allocation38_spill] sm:$0xff] }
 0x103   : > { %v1056_v12 = vadd.f32 %v3179_v27, %v1054_v37 }
 0x105   : > { %v1057_v38 = vadd.f32 %v1056_v12, %v2857_v57 }
 0x107   : > { %v1058_v40 = vadd.f32 %v1057_v38, %v2862_v54  ;;  %v4070_v38 = vld [vmem:[#allocation66_spill] sm:$0xff] }
 0x109   : > { %v1060_v7 = vadd.f32 %v3183_v33, %v1058_v40 }
 0x10b   : > { %v1061_v29 = vadd.f32 %v1060_v7, %v2873_v63  ;;  %v4071_v7 = vld [vmem:[#allocation42_spill] sm:$0xff] }
 0x10d   : > { %v1062_v34 = vadd.f32 %v1061_v29, %v2878_v50 }
 0x10f   : > { %v1064_v19 = vadd.f32 %v3187_v0, %v1062_v34  ;;  %v4072_v34 = vld [vmem:[#allocation24_spill] sm:$0xff] }
 0x111   : > { %v1065_v28 = vadd.f32 %v1064_v19, %v2888_v23 }
 0x113   : > { %v1066_v39 = vadd.f32 %v1065_v28, %v2895_v44  ;;  %v4073_v28 = vld [vmem:[#allocation15_spill] sm:$0xff] }
 0x115   : > { %v1068_v58 = vadd.f32 %v3193_v32, %v1066_v39 }
 0x117   : > { %v1069_v27 = vadd.f32 %v1068_v58, %v2905_v16  ;;  %v4074_v58 = vld [vmem:[#allocation39_spill] sm:$0xff] }
 0x119   : > { %v1070_v57 = vadd.f32 %v1069_v27, %v2910_v45 }
 0x11b   : > { %v1072_v54 = vadd.f32 %v3197_v21, %v1070_v57  ;;  %v4075_v57 = vld [vmem:[#allocation52_spill] sm:$0xff] }
 0x11d   : > { %v1073_v33 = vadd.f32 %v1072_v54, %v2920_v49 }
 0x11f   : > { %v1074_v63 = vadd.f32 %v1073_v33, %v2925_v2  ;;  %v4076_v33 = vld [vmem:[#allocation16_spill] sm:$0xff] }
 0x121   : > { %v1076_v50 = vadd.f32 %v3201_v42, %v1074_v63 }
 0x123   : > { %v1077_v0 = vadd.f32 %v1076_v50, %v2935_v4  ;;  %v4077_v50 = vld [vmem:[#allocation40_spill] sm:$0xff] }
 0x125   : > { %v1078_v23 = vadd.f32 %v1077_v0, %v2940_v5 }
 0x127   : > { %v1080_v44 = vadd.f32 %v3205_v62, %v1078_v23  ;;  %v4078_v23 = vld [vmem:[#allocation29_spill] sm:$0xff] }
 0x129   : > { %v1081_v32 = vadd.f32 %v1080_v44, %v4050_v30  ;;  %v4079_v30 = vld [vmem:[#allocation67_spill] sm:$0xff] }
 0x12b   : > { %v1082_v16 = vadd.f32 %v1081_v32, %v4051_v20  ;;  %v4080_v32 = vld [vmem:[#allocation17_spill] sm:$0xff] }
 0x12d   : > { %v1084_v45 = vadd.f32 %v4052_v18, %v1082_v16  ;;  %v4081_v18 = vld [vmem:[#allocation44_spill] sm:$0xff] }
 0x12f   : > { %v1085_v21 = vadd.f32 %v1084_v45, %v4053_v47  ;;  %v4082_v47 = vld [vmem:[#allocation18_spill] sm:$0xff] }
 0x131   : > { %v1086_v49 = vadd.f32 %v1085_v21, %v4054_v13 }
 0x133   : > { %v1088_v2 = vadd.f32 %v4055_v1, %v1086_v49  ;;  %v4083_v49 = vld [vmem:[#allocation45_spill] sm:$0xff] }
 0x135   : > { %v1089_v42 = vadd.f32 %v1088_v2, %v4056_v36  ;;  %v4084_v2 = vld [vmem:[#allocation43_spill] sm:$0xff] }
 0x137   : > { %v1090_v4 = vadd.f32 %v1089_v42, %v4057_v46 }
 0x139   : > { %v1092_v5 = vadd.f32 %v4058_v55, %v1090_v4 }
 0x13b   : > { %v1093_v62 = vadd.f32 %v1092_v5, %v4059_v51 }
 0x13d   : > { %v1094_v53 = vadd.f32 %v1093_v62, %v4060_v3  ;;  %v4085_v3 = vlaneseq }
 0x13f   : > { %v1096_v24 = vadd.f32 %v4061_v17, %v1094_v53 }
 0x141   : > { %v1097_v56 = vadd.f32 %v1096_v24, %v4062_v60 }
 0x143   : > { %v1098_v25 = vadd.f32 %v1097_v56, %v4063_v31 }
 0x145   : > { %v1100_v8 = vadd.f32 %v4064_v15, %v1098_v25 }
 0x147   : > { %v1101_v59 = vadd.f32 %v1100_v8, %v4065_v6 }
 0x149   : > { %v1102_v61 = vadd.f32 %v1101_v59, %v4066_v11 }
 0x14b   : > { %v1104_v52 = vadd.f32 %v4067_v41, %v1102_v61 }
 0x14d   : > { %v1105_v35 = vadd.f32 %v1104_v52, %v4068_v10 }
 0x14f   : > { %v1106_v37 = vadd.f32 %v1105_v35, %v4069_v22 }
 0x151   : > { %v1108_v12 = vadd.f32 %v3279_v26, %v1106_v37 }
 0x153   : > { %v1109_v40 = vadd.f32 %v1108_v12, %v4070_v38 }
 0x155   : > { %v1110_v29 = vadd.f32 %v1109_v40, %v4071_v7 }
 0x157   : > { %v1112_v19 = vadd.f32 %v4072_v34, %v1110_v29 }
 0x159   : > { %v1113_v39 = vadd.f32 %v1112_v19, %v4073_v28 }
 0x15b   : > { %v1114_v27 = vadd.f32 %v1113_v39, %v4074_v58 }
 0x15d   : > { %v1116_v54 = vadd.f32 %v4075_v57, %v1114_v27 }
 0x15f   : > { %v1117_v63 = vadd.f32 %v1116_v54, %v4076_v33 }
 0x161   : > { %v1118_v0 = vadd.f32 %v1117_v63, %v4077_v50 }
 0x163   : > { %v1120_v44 = vadd.f32 %v4078_v23, %v1118_v0 }
 0x165   : > { %v1121_v26 = vadd.f32 %v1120_v44, %v4079_v30 }
 0x167   : > { %v1122_v20 = vadd.f32 %v1121_v26, %v4080_v32 }
 0x169   : > { %v1124_v16 = vadd.f32 %v3353_v9, %v1122_v20 }
 0x16b   : > { %v1125_v45 = vadd.f32 %v1124_v16, %v4081_v18 }
 0x16d   : > { %v1126_v21 = vadd.f32 %v1125_v45, %v4082_v47 }
 0x16f   : > { %v1128_v13 = vadd.f32 %v3362_v48, %v1126_v21  ;;  %v1143_v48 = vand.u32 127, %v4085_v3 }
 0x171   : > { %v1129_v1 = vadd.f32 %v1128_v13, %v4083_v49  ;;  %vm1145_vm9 = vcmp.eq.s32.totalorder %v1143_v48, 0 }
 0x172   : > { %vm1146_vm10 = vmand %vm1144_vm5, %vm1145_vm9 }
 0x173   : > { %v1130_v36 = vadd.f32 %v1129_v1, %v4084_v2 }
 0x175   : > { %v1132_v42 = vadd.f32 %v3367_v14, %v1130_v36 }
 0x177   : > { %1133 = vadd.xlane.f32.xlu0 %v1132_v42 }
 0x200   : > { %v1134_v46 = vpop.xlane.xlu0 %1133 }
 0x201   : > { %v1135_v4 = vrot.slane %v1134_v46, 4 }
 0x203   : > { %v1136_v55 = vadd.f32 %v1135_v4, %v1134_v46 }
 0x205   : > { %v1137_v5 = vrot.slane %v1136_v55, 2 }
 0x207   : > { %v1138_v9 = vadd.f32 %v1137_v5, %v1136_v55 }
 0x209   : > { %v1139_v51 = vrot.slane %v1138_v9, 1 }
 0x20b   : > { %v1140_v62 = vadd.f32 %v1139_v51, %v1138_v9 }
 0x20d   : > { %1250 = vpush %v1140_v62 }
 0x23e   : > { %s1251_s19 = spop %1250 }
 0x23f   : > { %v1147_v14 = vstv %s1251_s19 }
 0x240   : > { %v1148_v53 = vsel %vm1146_vm10, %v1147_v14, 0.0 }
 0x241   : > { %1149 = vst [vmem:[%s214_s11] sm:$0xff] %v1148_v53 }
 0x242   : > { %1304 = shalt.err (!%p1301_p3)
}
 0x243   : > { %s1305_s30 = scalar_lea.hbm %s3440_s25, 128  ;;  %s1309_s6 = scalar_lea.hbm %s3478_s3, 256 }
 0x244   : > { %p1306_p4 = scmp.ne.s32.totalorder %s3440_s25, %s1305_s30  ;;  %p1310_p9 = scmp.lt.s32.totalorder %s3440_s25, %s3478_s3 }
 0x245   : > { %p1311_p10 = scmp.lt.s32.totalorder %s1309_s6, %s1305_s30 }
 0x246   : > { %p1307_p7 = pnand %p1306_p4, %p1412_p5 }
 0x247   : > { %p1312_p11 = por %p1311_p10, %p1310_p9 }
 0x248   : > { %p1308_p8 = pneg %p1307_p7 }
 0x24a   : > { %p1313_p12 = pnand %p1312_p11, %p1308_p8 }
 0x24c   : > { %1316 = shalt.err (!%p1313_p12)
}
 0x24d   : > { %1252 = dma.vmem_to_hbm [thread:$0]  (%p1412_p5), %s1165_s17, 128, %s3440_s25, %s1151_s26  }
 0x24e PF: > { %p1258_p13 = scmp.ge.s32.totalorder %s1351_s15, 2  ;;  %s1176_s9 = sand.u32 1, %s1339_s12  }
 0x24f   : > { %s1177_s10 = scalar_lea.sflag [#allocation3], %s1176_s9 }
 0x250   : > { %p1255_p0 = pnand %p1258_p13, %p1416_p6 }
 0x252   : > { %p1256_p1 = pneg %p1255_p0 }
 0x254   : > { %1334 = dma.done.wait (%p1256_p1), %s1177_s10, 128  }
 0x255   : > { %1336 = vsyncadd (%p1256_p1), %s1177_s10, 4294967168  ;;  %p13_p2 = scmp.ge.s32.totalorder %s1399_s18, 4   ;;  %s4086_s12 = smov %s1343_s13 }
 0x256   : > { %s4087_s13 = smov %s1347_s14  ;;  %s4088_s14 = smov %s1410_s21 }
 0x257   : > { %s4089_s15 = smov %s1399_s18  ;;  %15 = sbr.rel (!%p13_p2) target bundleno = 3 (0x3), region = 70 }
 0x25c   :  { %1182 = vsyncpa [#allocation3], 1 }
 0x25d   :  { %1184 = vsyncpa [#allocation3 + $0x1], 1 }

</bundles_post_ra>
